<compile_context>
chip_gen: v5e
topology: v5e:2x2
jax: 0.10.0
libtpu: 0.0.40
codegen_flags: <defaults>
</compile_context>

<pallas_src>
import functools

import jax
import jax.numpy as jnp
from jax.experimental import pallas as pl
from jax.experimental.pallas import tpu as pltpu


# =============================== Pallas kernels ===============================

def _upsample_matmul_kernel(x_ref, w_ref, b_ref, o_ref):
    # ConvTranspose3d(kernel=2, stride=2): every output voxel of a 2x2x2 block comes
    # from exactly one input voxel, so the op is a (8*Cout, Cin) x (Cin, D*H*W) matmul
    # per batch element.  The output is stored "transposed" so the long spatial axis
    # (D*H*W) sits on the lane axis (lane-dense stores).
    o_ref[...] = (
        jnp.dot(
            w_ref[...].astype(jnp.bfloat16),
            x_ref[...].astype(jnp.bfloat16),
            preferred_element_type=jnp.float32,
        )
        + b_ref[...]
    )


def _depthwise_stats_kernel(src_ref, dww_ref, mask_ref, conv_ref, stats_ref, *,
                            dil, n_rows, wp, win_start, win_len, inv_count):
    # Pass 1 of InvertedResidual3D for one (batch, depth-row) planar slab:
    # dilated depthwise 3x3x3 conv + per-row BatchNorm partial statistics.
    #   src_ref  : (n_rows, C, frame_len)  zero-padded (H, W) frames, all depth rows
    #   dww_ref  : (27, C, 1)              per-channel tap weights, k = kd*9+kh*3+kw
    #   mask_ref : (1, win_len)            1.0 on real voxels inside the conv window
    #   conv_ref : (C, win_len)            conv output window for this depth row
    #   stats_ref: (C, 2)                  col 0 = mean, col 1 = sum((x - mean)^2)
    d = pl.program_id(1)
    acc = None
    for kd in range(3):
        rr = d + (kd - 1) * dil                    # depth tap (may fall in the halo)
        valid = jnp.logical_and(rr >= 0, rr < n_rows).astype(jnp.float32)
        rrc = jnp.clip(rr, 0, n_rows - 1)
        for kh in range(3):
            for kw in range(3):
                k = kd * 9 + kh * 3 + kw
                off = win_start + ((kh - 1) * wp + (kw - 1)) * dil
                # Shifted window read straight from the VMEM ref: no materialized
                # shifted copies of the activation.
                win = src_ref[rrc, :, pl.ds(off, win_len)]          # (C, win_len)
                term = win * (dww_ref[k] * valid)
                acc = term if acc is None else acc + term

    mask = mask_ref[...]
    mean = jnp.sum(acc * mask, axis=1, keepdims=True) * inv_count   # (C, 1)
    diff = (acc - mean) * mask
    m2 = jnp.sum(diff * diff, axis=1, keepdims=True)                # (C, 1)

    conv_ref[...] = acc
    stats_ref[:, 0:1] = mean
    stats_ref[:, 1:2] = m2


def _bn_relu6_pointwise_kernel(conv_ref, sc_ref, sh_ref, pw_ref, mask_ref, o_ref, *,
                               win_start, win_len):
    # Pass 2 of deepwise1: folded BN + ReLU6 + pointwise 1x1x1 conv, re-emitted
    # directly as a zero-padded planar frame so it feeds the next depthwise conv
    # without any HBM pad/concat round trip.
    y = jnp.clip(conv_ref[...] * sc_ref[...] + sh_ref[...], 0.0, 6.0)
    z = jnp.dot(
        pw_ref[...].astype(jnp.bfloat16),
        y.astype(jnp.bfloat16),
        preferred_element_type=jnp.float32,
    )
    o_ref[...] = jnp.zeros_like(o_ref)                      # zero halo of the frame
    o_ref[:, pl.ds(win_start, win_len)] = z * mask_ref[...]


def _bn_relu6_pointwise_residual_kernel(conv_ref, sc_ref, sh_ref, pw_ref,
                                        x1_ref, res_ref, o_ref, *,
                                        win_start, win_len):
    # Pass 2 of deepwise2, fused with the residual 1x1x1 conv (self.resnet) and the
    # final torch.add, so the residual path never makes a separate HBM pass.
    y = jnp.clip(conv_ref[...] * sc_ref[...] + sh_ref[...], 0.0, 6.0)
    main = jnp.dot(
        pw_ref[...].astype(jnp.bfloat16),
        y.astype(jnp.bfloat16),
        preferred_element_type=jnp.float32,
    )
    x1w = x1_ref[:, pl.ds(win_start, win_len)]
    resid = jnp.dot(
        res_ref[...].astype(jnp.bfloat16),
        x1w.astype(jnp.bfloat16),
        preferred_element_type=jnp.float32,
    )
    o_ref[...] = main + resid


# ============================ pallas_call wrappers ============================

_PAR2 = pltpu.CompilerParams(dimension_semantics=("parallel", "parallel"))


def upsample_matmul(x_flat, w_t, b_col):
    n, cin, m = x_flat.shape
    ko = w_t.shape[0]
    return pl.pallas_call(
        _upsample_matmul_kernel,
        out_shape=jax.ShapeDtypeStruct((n, ko, m), jnp.float32),
        grid=(n,),
        in_specs=[
            pl.BlockSpec((None, cin, m), lambda i: (i, 0, 0)),
            pl.BlockSpec((ko, cin), lambda i: (0, 0)),
            pl.BlockSpec((ko, 1), lambda i: (0, 0)),
        ],
        out_specs=pl.BlockSpec((None, ko, m), lambda i: (i, 0, 0)),
        compiler_params=pltpu.CompilerParams(dimension_semantics=("parallel",)),
    )(x_flat, w_t, b_col)


def depthwise_pass1(src, dww, mask, *, dil, wp, win_start, win_len, hw):
    n, n_rows, c, frame_len = src.shape
    kern = functools.partial(
        _depthwise_stats_kernel, dil=dil, n_rows=n_rows, wp=wp,
        win_start=win_start, win_len=win_len, inv_count=1.0 / hw)
    return pl.pallas_call(
        kern,
        out_shape=(
            jax.ShapeDtypeStruct((n, n_rows, c, win_len), jnp.float32),
            jax.ShapeDtypeStruct((n, n_rows, c, 2), jnp.float32),
        ),
        grid=(n, n_rows),
        in_specs=[
            # The padded volume of one batch element stays resident (fetched once per
            # batch index); compute + stores are tiled and pipelined over (N, 2D).
            pl.BlockSpec((None, n_rows, c, frame_len), lambda i, j: (i, 0, 0, 0)),
            pl.BlockSpec((27, c, 1), lambda i, j: (0, 0, 0)),
            pl.BlockSpec((1, win_len), lambda i, j: (0, 0)),
        ],
        out_specs=(
            pl.BlockSpec((None, None, c, win_len), lambda i, j: (i, j, 0, 0)),
            pl.BlockSpec((None, None, c, 2), lambda i, j: (i, j, 0, 0)),
        ),
        compiler_params=_PAR2,
    )(src, dww, mask)


def bn_relu6_pointwise(conv, scale, shift, pw, mask, *, win_start, frame_len):
    n, n_rows, c, win_len = conv.shape
    co = pw.shape[0]
    kern = functools.partial(_bn_relu6_pointwise_kernel,
                             win_start=win_start, win_len=win_len)
    return pl.pallas_call(
        kern,
        out_shape=jax.ShapeDtypeStruct((n, n_rows, co, frame_len), jnp.float32),
        grid=(n, n_rows),
        in_specs=[
            pl.BlockSpec((None, None, c, win_len), lambda i, j: (i, j, 0, 0)),
            pl.BlockSpec((c, 1), lambda i, j: (0, 0)),
            pl.BlockSpec((c, 1), lambda i, j: (0, 0)),
            pl.BlockSpec((co, c), lambda i, j: (0, 0)),
            pl.BlockSpec((1, win_len), lambda i, j: (0, 0)),
        ],
        out_specs=pl.BlockSpec((None, None, co, frame_len), lambda i, j: (i, j, 0, 0)),
        compiler_params=_PAR2,
    )(conv, scale, shift, pw, mask)


def bn_relu6_pointwise_residual(conv, scale, shift, pw, x1_pp, res_w, *, win_start):
    n, n_rows, c, win_len = conv.shape
    co = pw.shape[0]
    frame_len = x1_pp.shape[-1]
    kern = functools.partial(_bn_relu6_pointwise_residual_kernel,
                             win_start=win_start, win_len=win_len)
    return pl.pallas_call(
        kern,
        out_shape=jax.ShapeDtypeStruct((n, n_rows, co, win_len), jnp.float32),
        grid=(n, n_rows),
        in_specs=[
            pl.BlockSpec((None, None, c, win_len), lambda i, j: (i, j, 0, 0)),
            pl.BlockSpec((c, 1), lambda i, j: (0, 0)),
            pl.BlockSpec((c, 1), lambda i, j: (0, 0)),
            pl.BlockSpec((co, c), lambda i, j: (0, 0)),
            pl.BlockSpec((None, None, c, frame_len), lambda i, j: (i, j, 0, 0)),
            pl.BlockSpec((co, c), lambda i, j: (0, 0)),
        ],
        out_specs=pl.BlockSpec((None, None, co, win_len), lambda i, j: (i, j, 0, 0)),
        compiler_params=_PAR2,
    )(conv, scale, shift, pw, x1_pp, res_w)


# ------------------------------- JAX-side glue --------------------------------

def _fold_bn(stats, gamma, beta, hw, eps=1e-5):
    # Merge per-row (mean, M2) partials with the stable parallel-variance formula,
    # then fold BatchNorm (training-mode batch statistics) into scale/shift columns.
    means = stats[..., 0]                                    # (N, 2D, C)
    m2 = stats[..., 1]
    rows = means.shape[0] * means.shape[1]
    mean_tot = jnp.mean(means, axis=(0, 1))                  # (C,)
    m2_tot = jnp.sum(m2, axis=(0, 1)) + hw * jnp.sum((means - mean_tot) ** 2,
                                                     axis=(0, 1))
    var = m2_tot / (hw * rows)                               # biased, like BN training
    inv = jax.lax.rsqrt(var + eps)
    scale = gamma * inv
    shift = beta - mean_tot * scale
    c = gamma.shape[0]
    return scale.reshape(c, 1), shift.reshape(c, 1)


def up3d_forward(x, y, params, *, expand):
    # x: (N, Cin, D, H, W), y: (N, Cin - Cout, 2D, 2H, 2W)  -- NCDHW, like PyTorch.
    n, cin, d, h, w = x.shape
    cout = params["res_w"].shape[0]
    dil = expand
    dd, hh, ww = 2 * d, 2 * h, 2 * w
    hhp, wwp = hh + 2 * dil, ww + 2 * dil
    frame_len = hhp * wwp                       # zero-padded (H, W) plane, flattened
    win_start = dil * wwp + dil                 # first real voxel inside the frame
    win_len = (hh - 1) * wwp + ww               # contiguous window over all real voxels

    # lane mask: 1.0 on real voxels inside the conv window, 0.0 on W-padding lanes
    mask = jnp.zeros((hh, wwp), jnp.float32).at[:, :ww].set(1.0)
    mask = mask.reshape(-1)[:win_len].reshape(1, win_len)

    # ---- self.up: ConvTranspose3d(Cin, Cout, 2, stride=2) as a channel matmul ----
    up_raw = upsample_matmul(x.reshape(n, cin, d * h * w),
                             params["up_w"], params["up_b"])        # (N, 8Cout, DHW)

    # ---- single fused repack: 2x2x2 interleave + skip concat + H/W zero-pad ----
    # TODO(synk): the strided 2x2x2 interleave/scatter has no contiguous-BlockSpec
    # expression, so it is one JAX-level copy instead of being fused into the
    # upsample kernel's out_spec.
    up5 = up_raw.reshape(n, 2, 2, 2, cout, d, h, w)
    up5 = jnp.transpose(up5, (0, 5, 1, 4, 6, 2, 7, 3)).reshape(n, dd, cout, hh, ww)
    y_pl = jnp.transpose(y, (0, 2, 1, 3, 4))                        # (N, 2D, Cy, 2H, 2W)
    x1 = jnp.concatenate([up5, y_pl], axis=2)                       # torch.cat(dim=1)
    x1_pp = jnp.pad(x1, ((0, 0), (0, 0), (0, 0), (dil, dil), (dil, dil)))
    x1_pp = x1_pp.reshape(n, dd, cin, frame_len)                    # planar, lane-dense

    # ---- self.deepwise1 : InvertedResidual3D(Cin -> Cin) ----
    conv1, st1 = depthwise_pass1(x1_pp, params["dw1_w"], mask, dil=dil, wp=wwp,
                                 win_start=win_start, win_len=win_len, hw=hh * ww)
    sc1, sh1 = _fold_bn(st1, params["bn1_g"], params["bn1_b"], hh * ww)
    h1_pp = bn_relu6_pointwise(conv1, sc1, sh1, params["pw1_w"], mask,
                               win_start=win_start, frame_len=frame_len)

    # ---- self.deepwise2 (Cin -> Cout) + self.resnet + torch.add, fused ----
    conv2, st2 = depthwise_pass1(h1_pp, params["dw2_w"], mask, dil=dil, wp=wwp,
                                 win_start=win_start, win_len=win_len, hw=hh * ww)
    sc2, sh2 = _fold_bn(st2, params["bn2_g"], params["bn2_b"], hh * ww)
    out_win = bn_relu6_pointwise_residual(conv2, sc2, sh2, params["pw2_w"], x1_pp,
                                          params["res_w"], win_start=win_start)

    # ---- drop the W-padding lanes of the window and return NCDHW ----
    out = jnp.pad(out_win, ((0, 0), (0, 0), (0, 0), (0, wwp - ww)))
    out = out.reshape(n, dd, cout, hh, wwp)[..., :ww]
    return jnp.transpose(out, (0, 2, 1, 3, 4))                      # (N, Cout, 2D, 2H, 2W)


# ------------------------- deterministic parameters --------------------------

def init_params(key, inp_c, out_c):
    ks = jax.random.split(key, 11)
    s = 0.1

    # ConvTranspose3d: PyTorch weight (inp, out, 2, 2, 2), bias (out,)
    w_up = s * jax.random.normal(ks[0], (inp_c, out_c, 2, 2, 2), jnp.float32)
    b_up = s * jax.random.normal(ks[1], (out_c,), jnp.float32)
    up_w = jnp.transpose(w_up, (2, 3, 4, 1, 0)).reshape(8 * out_c, inp_c)  # rows (kd,kh,kw,co)
    up_b = jnp.tile(b_up, 8).reshape(8 * out_c, 1)

    def ir_params(kd_, kg, kb, kp, cin, coup):
        # depthwise Conv3d weight (cin, 1, 3, 3, 3) -> (27, cin, 1), k = kd*9+kh*3+kw
        dw_t = s * jax.random.normal(kd_, (cin, 1, 3, 3, 3), jnp.float32)
        dww = jnp.transpose(dw_t[:, 0], (1, 2, 3, 0)).reshape(27, cin, 1)
        g = 1.0 + s * jax.random.normal(kg, (cin,), jnp.float32)
        b = s * jax.random.normal(kb, (cin,), jnp.float32)
        # pointwise Conv3d weight (coup, cin, 1, 1, 1) -> (coup, cin)
        pw_t = s * jax.random.normal(kp, (coup, cin, 1, 1, 1), jnp.float32)
        return dww, g, b, pw_t[:, :, 0, 0, 0]

    dw1_w, bn1_g, bn1_b, pw1_w = ir_params(ks[2], ks[3], ks[4], ks[5], inp_c, inp_c)
    dw2_w, bn2_g, bn2_b, pw2_w = ir_params(ks[6], ks[7], ks[8], ks[9], inp_c, out_c)

    # resnet Conv3d(inp, out, 1, bias=False): (out, inp, 1, 1, 1) -> (out, inp)
    res_t = s * jax.random.normal(ks[10], (out_c, inp_c, 1, 1, 1), jnp.float32)
    res_w = res_t[:, :, 0, 0, 0]

    return dict(up_w=up_w, up_b=up_b,
                dw1_w=dw1_w, bn1_g=bn1_g, bn1_b=bn1_b, pw1_w=pw1_w,
                dw2_w=dw2_w, bn2_g=bn2_g, bn2_b=bn2_b, pw2_w=pw2_w,
                res_w=res_w)


if __name__ == "__main__":
    inp_c, out_c, expand = 8, 4, 2
    n, d, h, w = 2, 4, 4, 4                      # x spatial; y is the skip at 2x spatial

    key = jax.random.PRNGKey(0)
    k_p, k_x, k_y = jax.random.split(key, 3)
    params = init_params(k_p, inp_c, out_c)

    # NCDHW, exactly like the PyTorch module's inputs.
    x = jax.random.normal(k_x, (n, inp_c, d, h, w), jnp.float32)
    y = jax.random.normal(k_y, (n, inp_c - out_c, 2 * d, 2 * h, 2 * w), jnp.float32)

    fwd = jax.jit(functools.partial(up3d_forward, expand=expand))
    out = jax.block_until_ready(fwd(x, y, params))

    assert out.shape == (n, out_c, 2 * d, 2 * h, 2 * w)
    assert bool(jnp.all(jnp.isfinite(out)))
    print("KERNEL_OK")
</pallas_src>

<mosaic_0001>
module attributes {stable_mosaic.version = 11 : i64} {
  func.func @_upsample_matmul_kernel(%arg0: i32, %arg1: memref<1x8x64xf32, #tpu.memory_space<vmem>>, %arg2: memref<32x8xf32, #tpu.memory_space<vmem>>, %arg3: memref<32x1xf32, #tpu.memory_space<vmem>>, %arg4: memref<1x32x64xf32, #tpu.memory_space<vmem>>) attributes {dimension_semantics = [#tpu.dimension_semantics<parallel>], iteration_bounds = array<i64: 2>, scalar_prefetch = 0 : i64, scratch_operands = 0 : i64, tpu.core_type = #tpu.core_type<tc>, window_params = [{transform_indices = @transform_0, window_bounds = array<i64: 1, 8, 64>}, {pipeline_mode = #tpu.pipeline_mode<synchronous>, transform_indices = @transform_1, window_bounds = array<i64: 32, 8>}, {pipeline_mode = #tpu.pipeline_mode<synchronous>, transform_indices = @transform_2, window_bounds = array<i64: 32, 1>}, {transform_indices = @transform_3, window_bounds = array<i64: 1, 32, 64>}]} {
    %c0 = arith.constant 0 : index
    %c0_0 = arith.constant 0 : index
    %0 = vector.load %arg2[%c0, %c0_0] : memref<32x8xf32, #tpu.memory_space<vmem>>, vector<32x8xf32>
    %1 = arith.truncf %0 : vector<32x8xf32> to vector<32x8xbf16>
    %c0_1 = arith.constant 0 : index
    %c0_2 = arith.constant 0 : index
    %c0_3 = arith.constant 0 : index
    %2 = vector.load %arg1[%c0_1, %c0_2, %c0_3] : memref<1x8x64xf32, #tpu.memory_space<vmem>>, vector<1x8x64xf32>
    %3 = vector.shape_cast %2 : vector<1x8x64xf32> to vector<8x64xf32>
    %4 = arith.truncf %3 : vector<8x64xf32> to vector<8x64xbf16>
    %cst = arith.constant dense<0.000000e+00> : vector<32x64xf32>
    %5 = tpu.matmul %1, %4, %cst {dimension_numbers = #tpu.dot_dimension_numbers<[1], [0], [0], [1], [0, 0, 1, 1], [], []>} : vector<32x8xbf16>, vector<8x64xbf16>, vector<32x64xf32> -> vector<32x64xf32>
    %c0_4 = arith.constant 0 : index
    %c0_5 = arith.constant 0 : index
    %6 = vector.load %arg3[%c0_4, %c0_5] : memref<32x1xf32, #tpu.memory_space<vmem>>, vector<32x1xf32>
    %7 = vector.broadcast %6 : vector<32x1xf32> to vector<32x64xf32>
    %8 = arith.addf %5, %7 : vector<32x64xf32>
    %c0_6 = arith.constant 0 : index
    %c0_7 = arith.constant 0 : index
    %c0_8 = arith.constant 0 : index
    %9 = vector.load %arg4[%c0_6, %c0_7, %c0_8] : memref<1x32x64xf32, #tpu.memory_space<vmem>>, vector<1x32x64xf32>
    %10 = vector.shape_cast %9 : vector<1x32x64xf32> to vector<32x64xf32>
    %11 = vector.shape_cast %8 : vector<32x64xf32> to vector<1x32x64xf32>
    tpu.vector_store %arg4[%c0_6, %c0_7, %c0_8], %11 {strides = array<i32>} : memref<1x32x64xf32, #tpu.memory_space<vmem>>, vector<1x32x64xf32>,
    return
  }
  func.func @transform_0(%arg0: i32) -> (i32, i32, i32) {
    %c0_i32 = arith.constant 0 : i32
    %c0_i32_0 = arith.constant 0 : i32
    %c0_i32_1 = arith.constant 0 : i32
    return %arg0, %c0_i32, %c0_i32_0 : i32, i32, i32
  }
  func.func @transform_1(%arg0: i32) -> (i32, i32) {
    %c0_i32 = arith.constant 0 : i32
    %c0_i32_0 = arith.constant 0 : i32
    %c0_i32_1 = arith.constant 0 : i32
    return %c0_i32, %c0_i32_0 : i32, i32
  }
  func.func @transform_2(%arg0: i32) -> (i32, i32) {
    %c0_i32 = arith.constant 0 : i32
    %c0_i32_0 = arith.constant 0 : i32
    %c0_i32_1 = arith.constant 0 : i32
    return %c0_i32, %c0_i32_0 : i32, i32
  }
  func.func @transform_3(%arg0: i32) -> (i32, i32, i32) {
    %c0_i32 = arith.constant 0 : i32
    %c0_i32_0 = arith.constant 0 : i32
    %c0_i32_1 = arith.constant 0 : i32
    return %arg0, %c0_i32, %c0_i32_0 : i32, i32, i32
  }
}

module attributes {stable_mosaic.version = 11 : i64} {
  func.func @_depthwise_stats_kernel(%arg0: i32, %arg1: i32, %arg2: memref<1x8x8x144xf32, #tpu.memory_space<vmem>>, %arg3: memref<27x8x1xf32, #tpu.memory_space<vmem>>, %arg4: memref<1x92xf32, #tpu.memory_space<vmem>>, %arg5: memref<1x1x8x92xf32, #tpu.memory_space<vmem>>, %arg6: memref<1x1x8x2xf32, #tpu.memory_space<vmem>>) attributes {dimension_semantics = [#tpu.dimension_semantics<parallel>, #tpu.dimension_semantics<parallel>], iteration_bounds = array<i64: 2, 8>, scalar_prefetch = 0 : i64, scratch_operands = 0 : i64, tpu.core_type = #tpu.core_type<tc>, window_params = [{transform_indices = @transform_0, window_bounds = array<i64: 1, 8, 8, 144>}, {pipeline_mode = #tpu.pipeline_mode<synchronous>, transform_indices = @transform_1, window_bounds = array<i64: 27, 8, 1>}, {pipeline_mode = #tpu.pipeline_mode<synchronous>, transform_indices = @transform_2, window_bounds = array<i64: 1, 92>}, {transform_indices = @transform_3, window_bounds = array<i64: 1, 1, 8, 92>}, {transform_indices = @transform_4, window_bounds = array<i64: 1, 1, 8, 2>}]} {
    %c-2_i32 = arith.constant -2 : i32
    %0 = arith.addi %arg1, %c-2_i32 : i32
    %c0_i32 = arith.constant 0 : i32
    %1 = arith.cmpi sge, %0, %c0_i32 : i32
    %c8_i32 = arith.constant 8 : i32
    %2 = arith.cmpi slt, %0, %c8_i32 : i32
    %3 = arith.andi %1, %2 : i1
    %4 = arith.extui %3 : i1 to i32
    %5 = arith.sitofp %4 : i32 to f32
    %c0_i32_0 = arith.constant 0 : i32
    %c7_i32 = arith.constant 7 : i32
    %6 = arith.maxsi %c0_i32_0, %0 : i32
    %7 = arith.minsi %c7_i32, %6 : i32
    %c0 = arith.constant 0 : index
    %8 = arith.index_cast %7 : i32 to index
    %c0_1 = arith.constant 0 : index
    %c0_2 = arith.constant 0 : index
    %9 = vector.load %arg2[%c0, %8, %c0_1, %c0_2] : memref<1x8x8x144xf32, #tpu.memory_space<vmem>>, vector<1x1x8x92xf32>
    %10 = vector.shape_cast %9 : vector<1x1x8x92xf32> to vector<8x92xf32>
    %c0_3 = arith.constant 0 : index
    %c0_4 = arith.constant 0 : index
    %c0_5 = arith.constant 0 : index
    %11 = vector.load %arg3[%c0_3, %c0_4, %c0_5] : memref<27x8x1xf32, #tpu.memory_space<vmem>>, vector<1x8x1xf32>
    %12 = vector.shape_cast %11 : vector<1x8x1xf32> to vector<8x1xf32>
    %13 = vector.broadcast %5 : f32 to vector<8x1xf32>
    %14 = arith.mulf %12, %13 : vector<8x1xf32>
    %15 = vector.broadcast %14 : vector<8x1xf32> to vector<8x92xf32>
    %16 = arith.mulf %10, %15 : vector<8x92xf32>
    %c0_6 = arith.constant 0 : index
    %17 = arith.index_cast %7 : i32 to index
    %c0_7 = arith.constant 0 : index
    %c2 = arith.constant 2 : index
    %18 = vector.load %arg2[%c0_6, %17, %c0_7, %c2] : memref<1x8x8x144xf32, #tpu.memory_space<vmem>>, vector<1x1x8x92xf32>
    %19 = vector.shape_cast %18 : vector<1x1x8x92xf32> to vector<8x92xf32>
    %c1 = arith.constant 1 : index
    %c0_8 = arith.constant 0 : index
    %c0_9 = arith.constant 0 : index
    %20 = vector.load %arg3[%c1, %c0_8, %c0_9] : memref<27x8x1xf32, #tpu.memory_space<vmem>>, vector<1x8x1xf32>
    %21 = vector.shape_cast %20 : vector<1x8x1xf32> to vector<8x1xf32>
    %22 = vector.broadcast %5 : f32 to vector<8x1xf32>
    %23 = arith.mulf %21, %22 : vector<8x1xf32>
    %24 = vector.broadcast %23 : vector<8x1xf32> to vector<8x92xf32>
    %25 = arith.mulf %19, %24 : vector<8x92xf32>
    %26 = arith.addf %16, %25 : vector<8x92xf32>
    %c0_10 = arith.constant 0 : index
    %27 = arith.index_cast %7 : i32 to index
    %c0_11 = arith.constant 0 : index
    %c4 = arith.constant 4 : index
    %28 = vector.load %arg2[%c0_10, %27, %c0_11, %c4] : memref<1x8x8x144xf32, #tpu.memory_space<vmem>>, vector<1x1x8x92xf32>
    %29 = vector.shape_cast %28 : vector<1x1x8x92xf32> to vector<8x92xf32>
    %c2_12 = arith.constant 2 : index
    %c0_13 = arith.constant 0 : index
    %c0_14 = arith.constant 0 : index
    %30 = vector.load %arg3[%c2_12, %c0_13, %c0_14] : memref<27x8x1xf32, #tpu.memory_space<vmem>>, vector<1x8x1xf32>
    %31 = vector.shape_cast %30 : vector<1x8x1xf32> to vector<8x1xf32>
    %32 = vector.broadcast %5 : f32 to vector<8x1xf32>
    %33 = arith.mulf %31, %32 : vector<8x1xf32>
    %34 = vector.broadcast %33 : vector<8x1xf32> to vector<8x92xf32>
    %35 = arith.mulf %29, %34 : vector<8x92xf32>
    %36 = arith.addf %26, %35 : vector<8x92xf32>
    %c0_15 = arith.constant 0 : index
    %37 = arith.index_cast %7 : i32 to index
    %c0_16 = arith.constant 0 : index
    %c24 = arith.constant 24 : index
    %38 = vector.load %arg2[%c0_15, %37, %c0_16, %c24] : memref<1x8x8x144xf32, #tpu.memory_space<vmem>>, vector<1x1x8x92xf32>
    %39 = vector.shape_cast %38 : vector<1x1x8x92xf32> to vector<8x92xf32>
    %c3 = arith.constant 3 : index
    %c0_17 = arith.constant 0 : index
    %c0_18 = arith.constant 0 : index
    %40 = vector.load %arg3[%c3, %c0_17, %c0_18] : memref<27x8x1xf32, #tpu.memory_space<vmem>>, vector<1x8x1xf32>
    %41 = vector.shape_cast %40 : vector<1x8x1xf32> to vector<8x1xf32>
    %42 = vector.broadcast %5 : f32 to vector<8x1xf32>
    %43 = arith.mulf %41, %42 : vector<8x1xf32>
    %44 = vector.broadcast %43 : vector<8x1xf32> to vector<8x92xf32>
    %45 = arith.mulf %39, %44 : vector<8x92xf32>
    %46 = arith.addf %36, %45 : vector<8x92xf32>
    %c0_19 = arith.constant 0 : index
    %47 = arith.index_cast %7 : i32 to index
    %c0_20 = arith.constant 0 : index
    %c26 = arith.constant 26 : index
    %48 = vector.load %arg2[%c0_19, %47, %c0_20, %c26] : memref<1x8x8x144xf32, #tpu.memory_space<vmem>>, vector<1x1x8x92xf32>
    %49 = vector.shape_cast %48 : vector<1x1x8x92xf32> to vector<8x92xf32>
    %c4_21 = arith.constant 4 : index
    %c0_22 = arith.constant 0 : index
    %c0_23 = arith.constant 0 : index
    %50 = vector.load %arg3[%c4_21, %c0_22, %c0_23] : memref<27x8x1xf32, #tpu.memory_space<vmem>>, vector<1x8x1xf32>
    %51 = vector.shape_cast %50 : vector<1x8x1xf32> to vector<8x1xf32>
    %52 = vector.broadcast %5 : f32 to vector<8x1xf32>
    %53 = arith.mulf %51, %52 : vector<8x1xf32>
    %54 = vector.broadcast %53 : vector<8x1xf32> to vector<8x92xf32>
    %55 = arith.mulf %49, %54 : vector<8x92xf32>
    %56 = arith.addf %46, %55 : vector<8x92xf32>
    %c0_24 = arith.constant 0 : index
    %57 = arith.index_cast %7 : i32 to index
    %c0_25 = arith.constant 0 : index
    %c28 = arith.constant 28 : index
    %58 = vector.load %arg2[%c0_24, %57, %c0_25, %c28] : memref<1x8x8x144xf32, #tpu.memory_space<vmem>>, vector<1x1x8x92xf32>
    %59 = vector.shape_cast %58 : vector<1x1x8x92xf32> to vector<8x92xf32>
    %c5 = arith.constant 5 : index
    %c0_26 = arith.constant 0 : index
    %c0_27 = arith.constant 0 : index
    %60 = vector.load %arg3[%c5, %c0_26, %c0_27] : memref<27x8x1xf32, #tpu.memory_space<vmem>>, vector<1x8x1xf32>
    %61 = vector.shape_cast %60 : vector<1x8x1xf32> to vector<8x1xf32>
    %62 = vector.broadcast %5 : f32 to vector<8x1xf32>
    %63 = arith.mulf %61, %62 : vector<8x1xf32>
    %64 = vector.broadcast %63 : vector<8x1xf32> to vector<8x92xf32>
    %65 = arith.mulf %59, %64 : vector<8x92xf32>
    %66 = arith.addf %56, %65 : vector<8x92xf32>
    %c0_28 = arith.constant 0 : index
    %67 = arith.index_cast %7 : i32 to index
    %c0_29 = arith.constant 0 : index
    %c48 = arith.constant 48 : index
    %68 = vector.load %arg2[%c0_28, %67, %c0_29, %c48] : memref<1x8x8x144xf32, #tpu.memory_space<vmem>>, vector<1x1x8x92xf32>
    %69 = vector.shape_cast %68 : vector<1x1x8x92xf32> to vector<8x92xf32>
    %c6 = arith.constant 6 : index
    %c0_30 = arith.constant 0 : index
    %c0_31 = arith.constant 0 : index
    %70 = vector.load %arg3[%c6, %c0_30, %c0_31] : memref<27x8x1xf32, #tpu.memory_space<vmem>>, vector<1x8x1xf32>
    %71 = vector.shape_cast %70 : vector<1x8x1xf32> to vector<8x1xf32>
    %72 = vector.broadcast %5 : f32 to vector<8x1xf32>
    %73 = arith.mulf %71, %72 : vector<8x1xf32>
    %74 = vector.broadcast %73 : vector<8x1xf32> to vector<8x92xf32>
    %75 = arith.mulf %69, %74 : vector<8x92xf32>
    %76 = arith.addf %66, %75 : vector<8x92xf32>
    %c0_32 = arith.constant 0 : index
    %77 = arith.index_cast %7 : i32 to index
    %c0_33 = arith.constant 0 : index
    %c50 = arith.constant 50 : index
    %78 = vector.load %arg2[%c0_32, %77, %c0_33, %c50] : memref<1x8x8x144xf32, #tpu.memory_space<vmem>>, vector<1x1x8x92xf32>
    %79 = vector.shape_cast %78 : vector<1x1x8x92xf32> to vector<8x92xf32>
    %c7 = arith.constant 7 : index
    %c0_34 = arith.constant 0 : index
    %c0_35 = arith.constant 0 : index
    %80 = vector.load %arg3[%c7, %c0_34, %c0_35] : memref<27x8x1xf32, #tpu.memory_space<vmem>>, vector<1x8x1xf32>
    %81 = vector.shape_cast %80 : vector<1x8x1xf32> to vector<8x1xf32>
    %82 = vector.broadcast %5 : f32 to vector<8x1xf32>
    %83 = arith.mulf %81, %82 : vector<8x1xf32>
    %84 = vector.broadcast %83 : vector<8x1xf32> to vector<8x92xf32>
    %85 = arith.mulf %79, %84 : vector<8x92xf32>
    %86 = arith.addf %76, %85 : vector<8x92xf32>
    %c0_36 = arith.constant 0 : index
    %87 = arith.index_cast %7 : i32 to index
    %c0_37 = arith.constant 0 : index
    %c52 = arith.constant 52 : index
    %88 = vector.load %arg2[%c0_36, %87, %c0_37, %c52] : memref<1x8x8x144xf32, #tpu.memory_space<vmem>>, vector<1x1x8x92xf32>
    %89 = vector.shape_cast %88 : vector<1x1x8x92xf32> to vector<8x92xf32>
    %c8 = arith.constant 8 : index
    %c0_38 = arith.constant 0 : index
    %c0_39 = arith.constant 0 : index
    %90 = vector.load %arg3[%c8, %c0_38, %c0_39] : memref<27x8x1xf32, #tpu.memory_space<vmem>>, vector<1x8x1xf32>
    %91 = vector.shape_cast %90 : vector<1x8x1xf32> to vector<8x1xf32>
    %92 = vector.broadcast %5 : f32 to vector<8x1xf32>
    %93 = arith.mulf %91, %92 : vector<8x1xf32>
    %94 = vector.broadcast %93 : vector<8x1xf32> to vector<8x92xf32>
    %95 = arith.mulf %89, %94 : vector<8x92xf32>
    %96 = arith.addf %86, %95 : vector<8x92xf32>
    %c0_i32_40 = arith.constant 0 : i32
    %97 = arith.addi %arg1, %c0_i32_40 : i32
    %c0_i32_41 = arith.constant 0 : i32
    %98 = arith.cmpi sge, %97, %c0_i32_41 : i32
    %c8_i32_42 = arith.constant 8 : i32
    %99 = arith.cmpi slt, %97, %c8_i32_42 : i32
    %100 = arith.andi %98, %99 : i1
    %101 = arith.extui %100 : i1 to i32
    %102 = arith.sitofp %101 : i32 to f32
    %c0_i32_43 = arith.constant 0 : i32
    %c7_i32_44 = arith.constant 7 : i32
    %103 = arith.maxsi %c0_i32_43, %97 : i32
    %104 = arith.minsi %c7_i32_44, %103 : i32
    %c0_45 = arith.constant 0 : index
    %105 = arith.index_cast %104 : i32 to index
    %c0_46 = arith.constant 0 : index
    %c0_47 = arith.constant 0 : index
    %106 = vector.load %arg2[%c0_45, %105, %c0_46, %c0_47] : memref<1x8x8x144xf32, #tpu.memory_space<vmem>>, vector<1x1x8x92xf32>
    %107 = vector.shape_cast %106 : vector<1x1x8x92xf32> to vector<8x92xf32>
    %c9 = arith.constant 9 : index
    %c0_48 = arith.constant 0 : index
    %c0_49 = arith.constant 0 : index
    %108 = vector.load %arg3[%c9, %c0_48, %c0_49] : memref<27x8x1xf32, #tpu.memory_space<vmem>>, vector<1x8x1xf32>
    %109 = vector.shape_cast %108 : vector<1x8x1xf32> to vector<8x1xf32>
    %110 = vector.broadcast %102 : f32 to vector<8x1xf32>
    %111 = arith.mulf %109, %110 : vector<8x1xf32>
    %112 = vector.broadcast %111 : vector<8x1xf32> to vector<8x92xf32>
    %113 = arith.mulf %107, %112 : vector<8x92xf32>
    %114 = arith.addf %96, %113 : vector<8x92xf32>
    %c0_50 = arith.constant 0 : index
    %115 = arith.index_cast %104 : i32 to index
    %c0_51 = arith.constant 0 : index
    %c2_52 = arith.constant 2 : index
    %116 = vector.load %arg2[%c0_50, %115, %c0_51, %c2_52] : memref<1x8x8x144xf32, #tpu.memory_space<vmem>>, vector<1x1x8x92xf32>
    %117 = vector.shape_cast %116 : vector<1x1x8x92xf32> to vector<8x92xf32>
    %c10 = arith.constant 10 : index
    %c0_53 = arith.constant 0 : index
    %c0_54 = arith.constant 0 : index
    %118 = vector.load %arg3[%c10, %c0_53, %c0_54] : memref<27x8x1xf32, #tpu.memory_space<vmem>>, vector<1x8x1xf32>
    %119 = vector.shape_cast %118 : vector<1x8x1xf32> to vector<8x1xf32>
    %120 = vector.broadcast %102 : f32 to vector<8x1xf32>
    %121 = arith.mulf %119, %120 : vector<8x1xf32>
    %122 = vector.broadcast %121 : vector<8x1xf32> to vector<8x92xf32>
    %123 = arith.mulf %117, %122 : vector<8x92xf32>
    %124 = arith.addf %114, %123 : vector<8x92xf32>
    %c0_55 = arith.constant 0 : index
    %125 = arith.index_cast %104 : i32 to index
    %c0_56 = arith.constant 0 : index
    %c4_57 = arith.constant 4 : index
    %126 = vector.load %arg2[%c0_55, %125, %c0_56, %c4_57] : memref<1x8x8x144xf32, #tpu.memory_space<vmem>>, vector<1x1x8x92xf32>
    %127 = vector.shape_cast %126 : vector<1x1x8x92xf32> to vector<8x92xf32>
    %c11 = arith.constant 11 : index
    %c0_58 = arith.constant 0 : index
    %c0_59 = arith.constant 0 : index
    %128 = vector.load %arg3[%c11, %c0_58, %c0_59] : memref<27x8x1xf32, #tpu.memory_space<vmem>>, vector<1x8x1xf32>
    %129 = vector.shape_cast %128 : vector<1x8x1xf32> to vector<8x1xf32>
    %130 = vector.broadcast %102 : f32 to vector<8x1xf32>
    %131 = arith.mulf %129, %130 : vector<8x1xf32>
    %132 = vector.broadcast %131 : vector<8x1xf32> to vector<8x92xf32>
    %133 = arith.mulf %127, %132 : vector<8x92xf32>
    %134 = arith.addf %124, %133 : vector<8x92xf32>
    %c0_60 = arith.constant 0 : index
    %135 = arith.index_cast %104 : i32 to index
    %c0_61 = arith.constant 0 : index
    %c24_62 = arith.constant 24 : index
    %136 = vector.load %arg2[%c0_60, %135, %c0_61, %c24_62] : memref<1x8x8x144xf32, #tpu.memory_space<vmem>>, vector<1x1x8x92xf32>
    %137 = vector.shape_cast %136 : vector<1x1x8x92xf32> to vector<8x92xf32>
    %c12 = arith.constant 12 : index
    %c0_63 = arith.constant 0 : index
    %c0_64 = arith.constant 0 : index
    %138 = vector.load %arg3[%c12, %c0_63, %c0_64] : memref<27x8x1xf32, #tpu.memory_space<vmem>>, vector<1x8x1xf32>
    %139 = vector.shape_cast %138 : vector<1x8x1xf32> to vector<8x1xf32>
    %140 = vector.broadcast %102 : f32 to vector<8x1xf32>
    %141 = arith.mulf %139, %140 : vector<8x1xf32>
    %142 = vector.broadcast %141 : vector<8x1xf32> to vector<8x92xf32>
    %143 = arith.mulf %137, %142 : vector<8x92xf32>
    %144 = arith.addf %134, %143 : vector<8x92xf32>
    %c0_65 = arith.constant 0 : index
    %145 = arith.index_cast %104 : i32 to index
    %c0_66 = arith.constant 0 : index
    %c26_67 = arith.constant 26 : index
    %146 = vector.load %arg2[%c0_65, %145, %c0_66, %c26_67] : memref<1x8x8x144xf32, #tpu.memory_space<vmem>>, vector<1x1x8x92xf32>
    %147 = vector.shape_cast %146 : vector<1x1x8x92xf32> to vector<8x92xf32>
    %c13 = arith.constant 13 : index
    %c0_68 = arith.constant 0 : index
    %c0_69 = arith.constant 0 : index
    %148 = vector.load %arg3[%c13, %c0_68, %c0_69] : memref<27x8x1xf32, #tpu.memory_space<vmem>>, vector<1x8x1xf32>
    %149 = vector.shape_cast %148 : vector<1x8x1xf32> to vector<8x1xf32>
    %150 = vector.broadcast %102 : f32 to vector<8x1xf32>
    %151 = arith.mulf %149, %150 : vector<8x1xf32>
    %152 = vector.broadcast %151 : vector<8x1xf32> to vector<8x92xf32>
    %153 = arith.mulf %147, %152 : vector<8x92xf32>
    %154 = arith.addf %144, %153 : vector<8x92xf32>
    %c0_70 = arith.constant 0 : index
    %155 = arith.index_cast %104 : i32 to index
    %c0_71 = arith.constant 0 : index
    %c28_72 = arith.constant 28 : index
    %156 = vector.load %arg2[%c0_70, %155, %c0_71, %c28_72] : memref<1x8x8x144xf32, #tpu.memory_space<vmem>>, vector<1x1x8x92xf32>
    %157 = vector.shape_cast %156 : vector<1x1x8x92xf32> to vector<8x92xf32>
    %c14 = arith.constant 14 : index
    %c0_73 = arith.constant 0 : index
    %c0_74 = arith.constant 0 : index
    %158 = vector.load %arg3[%c14, %c0_73, %c0_74] : memref<27x8x1xf32, #tpu.memory_space<vmem>>, vector<1x8x1xf32>
    %159 = vector.shape_cast %158 : vector<1x8x1xf32> to vector<8x1xf32>
    %160 = vector.broadcast %102 : f32 to vector<8x1xf32>
    %161 = arith.mulf %159, %160 : vector<8x1xf32>
    %162 = vector.broadcast %161 : vector<8x1xf32> to vector<8x92xf32>
    %163 = arith.mulf %157, %162 : vector<8x92xf32>
    %164 = arith.addf %154, %163 : vector<8x92xf32>
    %c0_75 = arith.constant 0 : index
    %165 = arith.index_cast %104 : i32 to index
    %c0_76 = arith.constant 0 : index
    %c48_77 = arith.constant 48 : index
    %166 = vector.load %arg2[%c0_75, %165, %c0_76, %c48_77] : memref<1x8x8x144xf32, #tpu.memory_space<vmem>>, vector<1x1x8x92xf32>
    %167 = vector.shape_cast %166 : vector<1x1x8x92xf32> to vector<8x92xf32>
    %c15 = arith.constant 15 : index
    %c0_78 = arith.constant 0 : index
    %c0_79 = arith.constant 0 : index
    %168 = vector.load %arg3[%c15, %c0_78, %c0_79] : memref<27x8x1xf32, #tpu.memory_space<vmem>>, vector<1x8x1xf32>
    %169 = vector.shape_cast %168 : vector<1x8x1xf32> to vector<8x1xf32>
    %170 = vector.broadcast %102 : f32 to vector<8x1xf32>
    %171 = arith.mulf %169, %170 : vector<8x1xf32>
    %172 = vector.broadcast %171 : vector<8x1xf32> to vector<8x92xf32>
    %173 = arith.mulf %167, %172 : vector<8x92xf32>
    %174 = arith.addf %164, %173 : vector<8x92xf32>
    %c0_80 = arith.constant 0 : index
    %175 = arith.index_cast %104 : i32 to index
    %c0_81 = arith.constant 0 : index
    %c50_82 = arith.constant 50 : index
    %176 = vector.load %arg2[%c0_80, %175, %c0_81, %c50_82] : memref<1x8x8x144xf32, #tpu.memory_space<vmem>>, vector<1x1x8x92xf32>
    %177 = vector.shape_cast %176 : vector<1x1x8x92xf32> to vector<8x92xf32>
    %c16 = arith.constant 16 : index
    %c0_83 = arith.constant 0 : index
    %c0_84 = arith.constant 0 : index
    %178 = vector.load %arg3[%c16, %c0_83, %c0_84] : memref<27x8x1xf32, #tpu.memory_space<vmem>>, vector<1x8x1xf32>
    %179 = vector.shape_cast %178 : vector<1x8x1xf32> to vector<8x1xf32>
    %180 = vector.broadcast %102 : f32 to vector<8x1xf32>
    %181 = arith.mulf %179, %180 : vector<8x1xf32>
    %182 = vector.broadcast %181 : vector<8x1xf32> to vector<8x92xf32>
    %183 = arith.mulf %177, %182 : vector<8x92xf32>
    %184 = arith.addf %174, %183 : vector<8x92xf32>
    %c0_85 = arith.constant 0 : index
    %185 = arith.index_cast %104 : i32 to index
    %c0_86 = arith.constant 0 : index
    %c52_87 = arith.constant 52 : index
    %186 = vector.load %arg2[%c0_85, %185, %c0_86, %c52_87] : memref<1x8x8x144xf32, #tpu.memory_space<vmem>>, vector<1x1x8x92xf32>
    %187 = vector.shape_cast %186 : vector<1x1x8x92xf32> to vector<8x92xf32>
    %c17 = arith.constant 17 : index
    %c0_88 = arith.constant 0 : index
    %c0_89 = arith.constant 0 : index
    %188 = vector.load %arg3[%c17, %c0_88, %c0_89] : memref<27x8x1xf32, #tpu.memory_space<vmem>>, vector<1x8x1xf32>
    %189 = vector.shape_cast %188 : vector<1x8x1xf32> to vector<8x1xf32>
    %190 = vector.broadcast %102 : f32 to vector<8x1xf32>
    %191 = arith.mulf %189, %190 : vector<8x1xf32>
    %192 = vector.broadcast %191 : vector<8x1xf32> to vector<8x92xf32>
    %193 = arith.mulf %187, %192 : vector<8x92xf32>
    %194 = arith.addf %184, %193 : vector<8x92xf32>
    %c2_i32 = arith.constant 2 : i32
    %195 = arith.addi %arg1, %c2_i32 : i32
    %c0_i32_90 = arith.constant 0 : i32
    %196 = arith.cmpi sge, %195, %c0_i32_90 : i32
    %c8_i32_91 = arith.constant 8 : i32
    %197 = arith.cmpi slt, %195, %c8_i32_91 : i32
    %198 = arith.andi %196, %197 : i1
    %199 = arith.extui %198 : i1 to i32
    %200 = arith.sitofp %199 : i32 to f32
    %c0_i32_92 = arith.constant 0 : i32
    %c7_i32_93 = arith.constant 7 : i32
    %201 = arith.maxsi %c0_i32_92, %195 : i32
    %202 = arith.minsi %c7_i32_93, %201 : i32
    %c0_94 = arith.constant 0 : index
    %203 = arith.index_cast %202 : i32 to index
    %c0_95 = arith.constant 0 : index
    %c0_96 = arith.constant 0 : index
    %204 = vector.load %arg2[%c0_94, %203, %c0_95, %c0_96] : memref<1x8x8x144xf32, #tpu.memory_space<vmem>>, vector<1x1x8x92xf32>
    %205 = vector.shape_cast %204 : vector<1x1x8x92xf32> to vector<8x92xf32>
    %c18 = arith.constant 18 : index
    %c0_97 = arith.constant 0 : index
    %c0_98 = arith.constant 0 : index
    %206 = vector.load %arg3[%c18, %c0_97, %c0_98] : memref<27x8x1xf32, #tpu.memory_space<vmem>>, vector<1x8x1xf32>
    %207 = vector.shape_cast %206 : vector<1x8x1xf32> to vector<8x1xf32>
    %208 = vector.broadcast %200 : f32 to vector<8x1xf32>
    %209 = arith.mulf %207, %208 : vector<8x1xf32>
    %210 = vector.broadcast %209 : vector<8x1xf32> to vector<8x92xf32>
    %211 = arith.mulf %205, %210 : vector<8x92xf32>
    %212 = arith.addf %194, %211 : vector<8x92xf32>
    %c0_99 = arith.constant 0 : index
    %213 = arith.index_cast %202 : i32 to index
    %c0_100 = arith.constant 0 : index
    %c2_101 = arith.constant 2 : index
    %214 = vector.load %arg2[%c0_99, %213, %c0_100, %c2_101] : memref<1x8x8x144xf32, #tpu.memory_space<vmem>>, vector<1x1x8x92xf32>
    %215 = vector.shape_cast %214 : vector<1x1x8x92xf32> to vector<8x92xf32>
    %c19 = arith.constant 19 : index
    %c0_102 = arith.constant 0 : index
    %c0_103 = arith.constant 0 : index
    %216 = vector.load %arg3[%c19, %c0_102, %c0_103] : memref<27x8x1xf32, #tpu.memory_space<vmem>>, vector<1x8x1xf32>
    %217 = vector.shape_cast %216 : vector<1x8x1xf32> to vector<8x1xf32>
    %218 = vector.broadcast %200 : f32 to vector<8x1xf32>
    %219 = arith.mulf %217, %218 : vector<8x1xf32>
    %220 = vector.broadcast %219 : vector<8x1xf32> to vector<8x92xf32>
    %221 = arith.mulf %215, %220 : vector<8x92xf32>
    %222 = arith.addf %212, %221 : vector<8x92xf32>
    %c0_104 = arith.constant 0 : index
    %223 = arith.index_cast %202 : i32 to index
    %c0_105 = arith.constant 0 : index
    %c4_106 = arith.constant 4 : index
    %224 = vector.load %arg2[%c0_104, %223, %c0_105, %c4_106] : memref<1x8x8x144xf32, #tpu.memory_space<vmem>>, vector<1x1x8x92xf32>
    %225 = vector.shape_cast %224 : vector<1x1x8x92xf32> to vector<8x92xf32>
    %c20 = arith.constant 20 : index
    %c0_107 = arith.constant 0 : index
    %c0_108 = arith.constant 0 : index
    %226 = vector.load %arg3[%c20, %c0_107, %c0_108] : memref<27x8x1xf32, #tpu.memory_space<vmem>>, vector<1x8x1xf32>
    %227 = vector.shape_cast %226 : vector<1x8x1xf32> to vector<8x1xf32>
    %228 = vector.broadcast %200 : f32 to vector<8x1xf32>
    %229 = arith.mulf %227, %228 : vector<8x1xf32>
    %230 = vector.broadcast %229 : vector<8x1xf32> to vector<8x92xf32>
    %231 = arith.mulf %225, %230 : vector<8x92xf32>
    %232 = arith.addf %222, %231 : vector<8x92xf32>
    %c0_109 = arith.constant 0 : index
    %233 = arith.index_cast %202 : i32 to index
    %c0_110 = arith.constant 0 : index
    %c24_111 = arith.constant 24 : index
    %234 = vector.load %arg2[%c0_109, %233, %c0_110, %c24_111] : memref<1x8x8x144xf32, #tpu.memory_space<vmem>>, vector<1x1x8x92xf32>
    %235 = vector.shape_cast %234 : vector<1x1x8x92xf32> to vector<8x92xf32>
    %c21 = arith.constant 21 : index
    %c0_112 = arith.constant 0 : index
    %c0_113 = arith.constant 0 : index
    %236 = vector.load %arg3[%c21, %c0_112, %c0_113] : memref<27x8x1xf32, #tpu.memory_space<vmem>>, vector<1x8x1xf32>
    %237 = vector.shape_cast %236 : vector<1x8x1xf32> to vector<8x1xf32>
    %238 = vector.broadcast %200 : f32 to vector<8x1xf32>
    %239 = arith.mulf %237, %238 : vector<8x1xf32>
    %240 = vector.broadcast %239 : vector<8x1xf32> to vector<8x92xf32>
    %241 = arith.mulf %235, %240 : vector<8x92xf32>
    %242 = arith.addf %232, %241 : vector<8x92xf32>
    %c0_114 = arith.constant 0 : index
    %243 = arith.index_cast %202 : i32 to index
    %c0_115 = arith.constant 0 : index
    %c26_116 = arith.constant 26 : index
    %244 = vector.load %arg2[%c0_114, %243, %c0_115, %c26_116] : memref<1x8x8x144xf32, #tpu.memory_space<vmem>>, vector<1x1x8x92xf32>
    %245 = vector.shape_cast %244 : vector<1x1x8x92xf32> to vector<8x92xf32>
    %c22 = arith.constant 22 : index
    %c0_117 = arith.constant 0 : index
    %c0_118 = arith.constant 0 : index
    %246 = vector.load %arg3[%c22, %c0_117, %c0_118] : memref<27x8x1xf32, #tpu.memory_space<vmem>>, vector<1x8x1xf32>
    %247 = vector.shape_cast %246 : vector<1x8x1xf32> to vector<8x1xf32>
    %248 = vector.broadcast %200 : f32 to vector<8x1xf32>
    %249 = arith.mulf %247, %248 : vector<8x1xf32>
    %250 = vector.broadcast %249 : vector<8x1xf32> to vector<8x92xf32>
    %251 = arith.mulf %245, %250 : vector<8x92xf32>
    %252 = arith.addf %242, %251 : vector<8x92xf32>
    %c0_119 = arith.constant 0 : index
    %253 = arith.index_cast %202 : i32 to index
    %c0_120 = arith.constant 0 : index
    %c28_121 = arith.constant 28 : index
    %254 = vector.load %arg2[%c0_119, %253, %c0_120, %c28_121] : memref<1x8x8x144xf32, #tpu.memory_space<vmem>>, vector<1x1x8x92xf32>
    %255 = vector.shape_cast %254 : vector<1x1x8x92xf32> to vector<8x92xf32>
    %c23 = arith.constant 23 : index
    %c0_122 = arith.constant 0 : index
    %c0_123 = arith.constant 0 : index
    %256 = vector.load %arg3[%c23, %c0_122, %c0_123] : memref<27x8x1xf32, #tpu.memory_space<vmem>>, vector<1x8x1xf32>
    %257 = vector.shape_cast %256 : vector<1x8x1xf32> to vector<8x1xf32>
    %258 = vector.broadcast %200 : f32 to vector<8x1xf32>
    %259 = arith.mulf %257, %258 : vector<8x1xf32>
    %260 = vector.broadcast %259 : vector<8x1xf32> to vector<8x92xf32>
    %261 = arith.mulf %255, %260 : vector<8x92xf32>
    %262 = arith.addf %252, %261 : vector<8x92xf32>
    %c0_124 = arith.constant 0 : index
    %263 = arith.index_cast %202 : i32 to index
    %c0_125 = arith.constant 0 : index
    %c48_126 = arith.constant 48 : index
    %264 = vector.load %arg2[%c0_124, %263, %c0_125, %c48_126] : memref<1x8x8x144xf32, #tpu.memory_space<vmem>>, vector<1x1x8x92xf32>
    %265 = vector.shape_cast %264 : vector<1x1x8x92xf32> to vector<8x92xf32>
    %c24_127 = arith.constant 24 : index
    %c0_128 = arith.constant 0 : index
    %c0_129 = arith.constant 0 : index
    %266 = vector.load %arg3[%c24_127, %c0_128, %c0_129] : memref<27x8x1xf32, #tpu.memory_space<vmem>>, vector<1x8x1xf32>
    %267 = vector.shape_cast %266 : vector<1x8x1xf32> to vector<8x1xf32>
    %268 = vector.broadcast %200 : f32 to vector<8x1xf32>
    %269 = arith.mulf %267, %268 : vector<8x1xf32>
    %270 = vector.broadcast %269 : vector<8x1xf32> to vector<8x92xf32>
    %271 = arith.mulf %265, %270 : vector<8x92xf32>
    %272 = arith.addf %262, %271 : vector<8x92xf32>
    %c0_130 = arith.constant 0 : index
    %273 = arith.index_cast %202 : i32 to index
    %c0_131 = arith.constant 0 : index
    %c50_132 = arith.constant 50 : index
    %274 = vector.load %arg2[%c0_130, %273, %c0_131, %c50_132] : memref<1x8x8x144xf32, #tpu.memory_space<vmem>>, vector<1x1x8x92xf32>
    %275 = vector.shape_cast %274 : vector<1x1x8x92xf32> to vector<8x92xf32>
    %c25 = arith.constant 25 : index
    %c0_133 = arith.constant 0 : index
    %c0_134 = arith.constant 0 : index
    %276 = vector.load %arg3[%c25, %c0_133, %c0_134] : memref<27x8x1xf32, #tpu.memory_space<vmem>>, vector<1x8x1xf32>
    %277 = vector.shape_cast %276 : vector<1x8x1xf32> to vector<8x1xf32>
    %278 = vector.broadcast %200 : f32 to vector<8x1xf32>
    %279 = arith.mulf %277, %278 : vector<8x1xf32>
    %280 = vector.broadcast %279 : vector<8x1xf32> to vector<8x92xf32>
    %281 = arith.mulf %275, %280 : vector<8x92xf32>
    %282 = arith.addf %272, %281 : vector<8x92xf32>
    %c0_135 = arith.constant 0 : index
    %283 = arith.index_cast %202 : i32 to index
    %c0_136 = arith.constant 0 : index
    %c52_137 = arith.constant 52 : index
    %284 = vector.load %arg2[%c0_135, %283, %c0_136, %c52_137] : memref<1x8x8x144xf32, #tpu.memory_space<vmem>>, vector<1x1x8x92xf32>
    %285 = vector.shape_cast %284 : vector<1x1x8x92xf32> to vector<8x92xf32>
    %c26_138 = arith.constant 26 : index
    %c0_139 = arith.constant 0 : index
    %c0_140 = arith.constant 0 : index
    %286 = vector.load %arg3[%c26_138, %c0_139, %c0_140] : memref<27x8x1xf32, #tpu.memory_space<vmem>>, vector<1x8x1xf32>
    %287 = vector.shape_cast %286 : vector<1x8x1xf32> to vector<8x1xf32>
    %288 = vector.broadcast %200 : f32 to vector<8x1xf32>
    %289 = arith.mulf %287, %288 : vector<8x1xf32>
    %290 = vector.broadcast %289 : vector<8x1xf32> to vector<8x92xf32>
    %291 = arith.mulf %285, %290 : vector<8x92xf32>
    %292 = arith.addf %282, %291 : vector<8x92xf32>
    %c0_141 = arith.constant 0 : index
    %c0_142 = arith.constant 0 : index
    %293 = vector.load %arg4[%c0_141, %c0_142] : memref<1x92xf32, #tpu.memory_space<vmem>>, vector<1x92xf32>
    %294 = vector.broadcast %293 : vector<1x92xf32> to vector<8x92xf32>
    %295 = arith.mulf %292, %294 : vector<8x92xf32>
    %cst = arith.constant dense<0.000000e+00> : vector<8xf32>
    %296 = vector.multi_reduction <add>, %295, %cst [1] : vector<8x92xf32> to vector<8xf32>
    %297 = vector.shape_cast %296 : vector<8xf32> to vector<8x1xf32>
    %cst_143 = arith.constant 1.562500e-02 : f32
    %298 = vector.broadcast %cst_143 : f32 to vector<8x1xf32>
    %299 = arith.mulf %297, %298 : vector<8x1xf32>
    %300 = vector.broadcast %299 : vector<8x1xf32> to vector<8x92xf32>
    %301 = arith.subf %292, %300 : vector<8x92xf32>
    %302 = vector.broadcast %293 : vector<1x92xf32> to vector<8x92xf32>
    %303 = arith.mulf %301, %302 : vector<8x92xf32>
    %304 = arith.mulf %303, %303 : vector<8x92xf32>
    %cst_144 = arith.constant dense<0.000000e+00> : vector<8xf32>
    %305 = vector.multi_reduction <add>, %304, %cst_144 [1] : vector<8x92xf32> to vector<8xf32>
    %306 = vector.shape_cast %305 : vector<8xf32> to vector<8x1xf32>
    %c0_145 = arith.constant 0 : index
    %c0_146 = arith.constant 0 : index
    %c0_147 = arith.constant 0 : index
    %c0_148 = arith.constant 0 : index
    %307 = vector.load %arg5[%c0_145, %c0_146, %c0_147, %c0_148] : memref<1x1x8x92xf32, #tpu.memory_space<vmem>>, vector<1x1x8x92xf32>
    %308 = vector.shape_cast %307 : vector<1x1x8x92xf32> to vector<8x92xf32>
    %309 = vector.shape_cast %292 : vector<8x92xf32> to vector<1x1x8x92xf32>
    tpu.vector_store %arg5[%c0_145, %c0_146, %c0_147, %c0_148], %309 {strides = array<i32>} : memref<1x1x8x92xf32, #tpu.memory_space<vmem>>, vector<1x1x8x92xf32>,
    %c0_149 = arith.constant 0 : index
    %c0_150 = arith.constant 0 : index
    %c0_151 = arith.constant 0 : index
    %c0_152 = arith.constant 0 : index
    %310 = vector.load %arg6[%c0_149, %c0_150, %c0_151, %c0_152] : memref<1x1x8x2xf32, #tpu.memory_space<vmem>>, vector<1x1x8x1xf32>
    %311 = vector.shape_cast %310 : vector<1x1x8x1xf32> to vector<8x1xf32>
    %312 = vector.shape_cast %299 : vector<8x1xf32> to vector<1x1x8x1xf32>
    tpu.vector_store %arg6[%c0_149, %c0_150, %c0_151, %c0_152], %312 {strides = array<i32>} : memref<1x1x8x2xf32, #tpu.memory_space<vmem>>, vector<1x1x8x1xf32>,
    %c0_153 = arith.constant 0 : index
    %c0_154 = arith.constant 0 : index
    %c0_155 = arith.constant 0 : index
    %c1_156 = arith.constant 1 : index
    %313 = vector.load %arg6[%c0_153, %c0_154, %c0_155, %c1_156] : memref<1x1x8x2xf32, #tpu.memory_space<vmem>>, vector<1x1x8x1xf32>
    %314 = vector.shape_cast %313 : vector<1x1x8x1xf32> to vector<8x1xf32>
    %315 = vector.shape_cast %306 : vector<8x1xf32> to vector<1x1x8x1xf32>
    tpu.vector_store %arg6[%c0_153, %c0_154, %c0_155, %c1_156], %315 {strides = array<i32>} : memref<1x1x8x2xf32, #tpu.memory_space<vmem>>, vector<1x1x8x1xf32>,
    return
  }
  func.func @transform_0(%arg0: i32, %arg1: i32) -> (i32, i32, i32, i32) {
    %c0_i32 = arith.constant 0 : i32
    %c0_i32_0 = arith.constant 0 : i32
    %c0_i32_1 = arith.constant 0 : i32
    %c0_i32_2 = arith.constant 0 : i32
    return %arg0, %c0_i32, %c0_i32_0, %c0_i32_1 : i32, i32, i32, i32
  }
  func.func @transform_1(%arg0: i32, %arg1: i32) -> (i32, i32, i32) {
    %c0_i32 = arith.constant 0 : i32
    %c0_i32_0 = arith.constant 0 : i32
    %c0_i32_1 = arith.constant 0 : i32
    %c0_i32_2 = arith.constant 0 : i32
    return %c0_i32, %c0_i32_0, %c0_i32_1 : i32, i32, i32
  }
  func.func @transform_2(%arg0: i32, %arg1: i32) -> (i32, i32) {
    %c0_i32 = arith.constant 0 : i32
    %c0_i32_0 = arith.constant 0 : i32
    %c0_i32_1 = arith.constant 0 : i32
    return %c0_i32, %c0_i32_0 : i32, i32
  }
  func.func @transform_3(%arg0: i32, %arg1: i32) -> (i32, i32, i32, i32) {
    %c0_i32 = arith.constant 0 : i32
    %c0_i32_0 = arith.constant 0 : i32
    %c0_i32_1 = arith.constant 0 : i32
    return %arg0, %arg1, %c0_i32, %c0_i32_0 : i32, i32, i32, i32
  }
  func.func @transform_4(%arg0: i32, %arg1: i32) -> (i32, i32, i32, i32) {
    %c0_i32 = arith.constant 0 : i32
    %c0_i32_0 = arith.constant 0 : i32
    %c0_i32_1 = arith.constant 0 : i32
    return %arg0, %arg1, %c0_i32, %c0_i32_0 : i32, i32, i32, i32
  }
}

module attributes {stable_mosaic.version = 11 : i64} {
  func.func @_bn_relu6_pointwise_kernel(%arg0: i32, %arg1: i32, %arg2: memref<1x1x8x92xf32, #tpu.memory_space<vmem>>, %arg3: memref<8x1xf32, #tpu.memory_space<vmem>>, %arg4: memref<8x1xf32, #tpu.memory_space<vmem>>, %arg5: memref<8x8xf32, #tpu.memory_space<vmem>>, %arg6: memref<1x92xf32, #tpu.memory_space<vmem>>, %arg7: memref<1x1x8x144xf32, #tpu.memory_space<vmem>>) attributes {dimension_semantics = [#tpu.dimension_semantics<parallel>, #tpu.dimension_semantics<parallel>], iteration_bounds = array<i64: 2, 8>, scalar_prefetch = 0 : i64, scratch_operands = 0 : i64, tpu.core_type = #tpu.core_type<tc>, window_params = [{transform_indices = @transform_0, window_bounds = array<i64: 1, 1, 8, 92>}, {pipeline_mode = #tpu.pipeline_mode<synchronous>, transform_indices = @transform_1, window_bounds = array<i64: 8, 1>}, {pipeline_mode = #tpu.pipeline_mode<synchronous>, transform_indices = @transform_2, window_bounds = array<i64: 8, 1>}, {pipeline_mode = #tpu.pipeline_mode<synchronous>, transform_indices = @transform_3, window_bounds = array<i64: 8, 8>}, {pipeline_mode = #tpu.pipeline_mode<synchronous>, transform_indices = @transform_4, window_bounds = array<i64: 1, 92>}, {transform_indices = @transform_5, window_bounds = array<i64: 1, 1, 8, 144>}]} {
    %c0 = arith.constant 0 : index
    %c0_0 = arith.constant 0 : index
    %c0_1 = arith.constant 0 : index
    %c0_2 = arith.constant 0 : index
    %0 = vector.load %arg2[%c0, %c0_0, %c0_1, %c0_2] : memref<1x1x8x92xf32, #tpu.memory_space<vmem>>, vector<1x1x8x92xf32>
    %1 = vector.shape_cast %0 : vector<1x1x8x92xf32> to vector<8x92xf32>
    %c0_3 = arith.constant 0 : index
    %c0_4 = arith.constant 0 : index
    %2 = vector.load %arg3[%c0_3, %c0_4] : memref<8x1xf32, #tpu.memory_space<vmem>>, vector<8x1xf32>
    %3 = vector.broadcast %2 : vector<8x1xf32> to vector<8x92xf32>
    %4 = arith.mulf %1, %3 : vector<8x92xf32>
    %c0_5 = arith.constant 0 : index
    %c0_6 = arith.constant 0 : index
    %5 = vector.load %arg4[%c0_5, %c0_6] : memref<8x1xf32, #tpu.memory_space<vmem>>, vector<8x1xf32>
    %6 = vector.broadcast %5 : vector<8x1xf32> to vector<8x92xf32>
    %7 = arith.addf %4, %6 : vector<8x92xf32>
    %cst = arith.constant 0.000000e+00 : f32
    %cst_7 = arith.constant 6.000000e+00 : f32
    %8 = vector.broadcast %cst : f32 to vector<8x92xf32>
    %9 = arith.maximumf %8, %7 : vector<8x92xf32>
    %10 = vector.broadcast %cst_7 : f32 to vector<8x92xf32>
    %11 = arith.minimumf %10, %9 : vector<8x92xf32>
    %c0_8 = arith.constant 0 : index
    %c0_9 = arith.constant 0 : index
    %12 = vector.load %arg5[%c0_8, %c0_9] : memref<8x8xf32, #tpu.memory_space<vmem>>, vector<8x8xf32>
    %13 = arith.truncf %12 : vector<8x8xf32> to vector<8x8xbf16>
    %14 = arith.truncf %11 : vector<8x92xf32> to vector<8x92xbf16>
    %cst_10 = arith.constant dense<0.000000e+00> : vector<8x92xf32>
    %15 = tpu.matmul %13, %14, %cst_10 {dimension_numbers = #tpu.dot_dimension_numbers<[1], [0], [0], [1], [0, 0, 1, 1], [], []>} : vector<8x8xbf16>, vector<8x92xbf16>, vector<8x92xf32> -> vector<8x92xf32>
    %cst_11 = arith.constant 0.000000e+00 : f32
    %16 = vector.broadcast %cst_11 : f32 to vector<8x144xf32>
    %c0_12 = arith.constant 0 : index
    %c0_13 = arith.constant 0 : index
    %c0_14 = arith.constant 0 : index
    %c0_15 = arith.constant 0 : index
    %17 = vector.load %arg7[%c0_12, %c0_13, %c0_14, %c0_15] : memref<1x1x8x144xf32, #tpu.memory_space<vmem>>, vector<1x1x8x144xf32>
    %18 = vector.shape_cast %17 : vector<1x1x8x144xf32> to vector<8x144xf32>
    %19 = vector.shape_cast %16 : vector<8x144xf32> to vector<1x1x8x144xf32>
    tpu.vector_store %arg7[%c0_12, %c0_13, %c0_14, %c0_15], %19 {strides = array<i32>} : memref<1x1x8x144xf32, #tpu.memory_space<vmem>>, vector<1x1x8x144xf32>,
    %c0_16 = arith.constant 0 : index
    %c0_17 = arith.constant 0 : index
    %20 = vector.load %arg6[%c0_16, %c0_17] : memref<1x92xf32, #tpu.memory_space<vmem>>, vector<1x92xf32>
    %21 = vector.broadcast %20 : vector<1x92xf32> to vector<8x92xf32>
    %22 = arith.mulf %15, %21 : vector<8x92xf32>
    %c0_18 = arith.constant 0 : index
    %c0_19 = arith.constant 0 : index
    %c0_20 = arith.constant 0 : index
    %c26 = arith.constant 26 : index
    %23 = vector.load %arg7[%c0_18, %c0_19, %c0_20, %c26] : memref<1x1x8x144xf32, #tpu.memory_space<vmem>>, vector<1x1x8x92xf32>
    %24 = vector.shape_cast %23 : vector<1x1x8x92xf32> to vector<8x92xf32>
    %25 = vector.shape_cast %22 : vector<8x92xf32> to vector<1x1x8x92xf32>
    tpu.vector_store %arg7[%c0_18, %c0_19, %c0_20, %c26], %25 {strides = array<i32>} : memref<1x1x8x144xf32, #tpu.memory_space<vmem>>, vector<1x1x8x92xf32>,
    return
  }
  func.func @transform_0(%arg0: i32, %arg1: i32) -> (i32, i32, i32, i32) {
    %c0_i32 = arith.constant 0 : i32
    %c0_i32_0 = arith.constant 0 : i32
    %c0_i32_1 = arith.constant 0 : i32
    return %arg0, %arg1, %c0_i32, %c0_i32_0 : i32, i32, i32, i32
  }
  func.func @transform_1(%arg0: i32, %arg1: i32) -> (i32, i32) {
    %c0_i32 = arith.constant 0 : i32
    %c0_i32_0 = arith.constant 0 : i32
    %c0_i32_1 = arith.constant 0 : i32
    return %c0_i32, %c0_i32_0 : i32, i32
  }
  func.func @transform_2(%arg0: i32, %arg1: i32) -> (i32, i32) {
    %c0_i32 = arith.constant 0 : i32
    %c0_i32_0 = arith.constant 0 : i32
    %c0_i32_1 = arith.constant 0 : i32
    return %c0_i32, %c0_i32_0 : i32, i32
  }
  func.func @transform_3(%arg0: i32, %arg1: i32) -> (i32, i32) {
    %c0_i32 = arith.constant 0 : i32
    %c0_i32_0 = arith.constant 0 : i32
    %c0_i32_1 = arith.constant 0 : i32
    return %c0_i32, %c0_i32_0 : i32, i32
  }
  func.func @transform_4(%arg0: i32, %arg1: i32) -> (i32, i32) {
    %c0_i32 = arith.constant 0 : i32
    %c0_i32_0 = arith.constant 0 : i32
    %c0_i32_1 = arith.constant 0 : i32
    return %c0_i32, %c0_i32_0 : i32, i32
  }
  func.func @transform_5(%arg0: i32, %arg1: i32) -> (i32, i32, i32, i32) {
    %c0_i32 = arith.constant 0 : i32
    %c0_i32_0 = arith.constant 0 : i32
    %c0_i32_1 = arith.constant 0 : i32
    return %arg0, %arg1, %c0_i32, %c0_i32_0 : i32, i32, i32, i32
  }
}

module attributes {stable_mosaic.version = 11 : i64} {
  func.func @_bn_relu6_pointwise_residual_kernel(%arg0: i32, %arg1: i32, %arg2: memref<1x1x8x92xf32, #tpu.memory_space<vmem>>, %arg3: memref<8x1xf32, #tpu.memory_space<vmem>>, %arg4: memref<8x1xf32, #tpu.memory_space<vmem>>, %arg5: memref<4x8xf32, #tpu.memory_space<vmem>>, %arg6: memref<1x1x8x144xf32, #tpu.memory_space<vmem>>, %arg7: memref<4x8xf32, #tpu.memory_space<vmem>>, %arg8: memref<1x1x4x92xf32, #tpu.memory_space<vmem>>) attributes {dimension_semantics = [#tpu.dimension_semantics<parallel>, #tpu.dimension_semantics<parallel>], iteration_bounds = array<i64: 2, 8>, scalar_prefetch = 0 : i64, scratch_operands = 0 : i64, tpu.core_type = #tpu.core_type<tc>, window_params = [{transform_indices = @transform_0, window_bounds = array<i64: 1, 1, 8, 92>}, {pipeline_mode = #tpu.pipeline_mode<synchronous>, transform_indices = @transform_1, window_bounds = array<i64: 8, 1>}, {pipeline_mode = #tpu.pipeline_mode<synchronous>, transform_indices = @transform_2, window_bounds = array<i64: 8, 1>}, {pipeline_mode = #tpu.pipeline_mode<synchronous>, transform_indices = @transform_3, window_bounds = array<i64: 4, 8>}, {transform_indices = @transform_4, window_bounds = array<i64: 1, 1, 8, 144>}, {pipeline_mode = #tpu.pipeline_mode<synchronous>, transform_indices = @transform_5, window_bounds = array<i64: 4, 8>}, {transform_indices = @transform_6, window_bounds = array<i64: 1, 1, 4, 92>}]} {
    %c0 = arith.constant 0 : index
    %c0_0 = arith.constant 0 : index
    %c0_1 = arith.constant 0 : index
    %c0_2 = arith.constant 0 : index
    %0 = vector.load %arg2[%c0, %c0_0, %c0_1, %c0_2] : memref<1x1x8x92xf32, #tpu.memory_space<vmem>>, vector<1x1x8x92xf32>
    %1 = vector.shape_cast %0 : vector<1x1x8x92xf32> to vector<8x92xf32>
    %c0_3 = arith.constant 0 : index
    %c0_4 = arith.constant 0 : index
    %2 = vector.load %arg3[%c0_3, %c0_4] : memref<8x1xf32, #tpu.memory_space<vmem>>, vector<8x1xf32>
    %3 = vector.broadcast %2 : vector<8x1xf32> to vector<8x92xf32>
    %4 = arith.mulf %1, %3 : vector<8x92xf32>
    %c0_5 = arith.constant 0 : index
    %c0_6 = arith.constant 0 : index
    %5 = vector.load %arg4[%c0_5, %c0_6] : memref<8x1xf32, #tpu.memory_space<vmem>>, vector<8x1xf32>
    %6 = vector.broadcast %5 : vector<8x1xf32> to vector<8x92xf32>
    %7 = arith.addf %4, %6 : vector<8x92xf32>
    %cst = arith.constant 0.000000e+00 : f32
    %cst_7 = arith.constant 6.000000e+00 : f32
    %8 = vector.broadcast %cst : f32 to vector<8x92xf32>
    %9 = arith.maximumf %8, %7 : vector<8x92xf32>
    %10 = vector.broadcast %cst_7 : f32 to vector<8x92xf32>
    %11 = arith.minimumf %10, %9 : vector<8x92xf32>
    %c0_8 = arith.constant 0 : index
    %c0_9 = arith.constant 0 : index
    %12 = vector.load %arg5[%c0_8, %c0_9] : memref<4x8xf32, #tpu.memory_space<vmem>>, vector<4x8xf32>
    %13 = arith.truncf %12 : vector<4x8xf32> to vector<4x8xbf16>
    %14 = arith.truncf %11 : vector<8x92xf32> to vector<8x92xbf16>
    %cst_10 = arith.constant dense<0.000000e+00> : vector<4x92xf32>
    %15 = tpu.matmul %13, %14, %cst_10 {dimension_numbers = #tpu.dot_dimension_numbers<[1], [0], [0], [1], [0, 0, 1, 1], [], []>} : vector<4x8xbf16>, vector<8x92xbf16>, vector<4x92xf32> -> vector<4x92xf32>
    %c0_11 = arith.constant 0 : index
    %c0_12 = arith.constant 0 : index
    %c0_13 = arith.constant 0 : index
    %c26 = arith.constant 26 : index
    %16 = vector.load %arg6[%c0_11, %c0_12, %c0_13, %c26] : memref<1x1x8x144xf32, #tpu.memory_space<vmem>>, vector<1x1x8x92xf32>
    %17 = vector.shape_cast %16 : vector<1x1x8x92xf32> to vector<8x92xf32>
    %c0_14 = arith.constant 0 : index
    %c0_15 = arith.constant 0 : index
    %18 = vector.load %arg7[%c0_14, %c0_15] : memref<4x8xf32, #tpu.memory_space<vmem>>, vector<4x8xf32>
    %19 = arith.truncf %18 : vector<4x8xf32> to vector<4x8xbf16>
    %20 = arith.truncf %17 : vector<8x92xf32> to vector<8x92xbf16>
    %cst_16 = arith.constant dense<0.000000e+00> : vector<4x92xf32>
    %21 = tpu.matmul %19, %20, %cst_16 {dimension_numbers = #tpu.dot_dimension_numbers<[1], [0], [0], [1], [0, 0, 1, 1], [], []>} : vector<4x8xbf16>, vector<8x92xbf16>, vector<4x92xf32> -> vector<4x92xf32>
    %22 = arith.addf %15, %21 : vector<4x92xf32>
    %c0_17 = arith.constant 0 : index
    %c0_18 = arith.constant 0 : index
    %c0_19 = arith.constant 0 : index
    %c0_20 = arith.constant 0 : index
    %23 = vector.load %arg8[%c0_17, %c0_18, %c0_19, %c0_20] : memref<1x1x4x92xf32, #tpu.memory_space<vmem>>, vector<1x1x4x92xf32>
    %24 = vector.shape_cast %23 : vector<1x1x4x92xf32> to vector<4x92xf32>
    %25 = vector.shape_cast %22 : vector<4x92xf32> to vector<1x1x4x92xf32>
    tpu.vector_store %arg8[%c0_17, %c0_18, %c0_19, %c0_20], %25 {strides = array<i32>} : memref<1x1x4x92xf32, #tpu.memory_space<vmem>>, vector<1x1x4x92xf32>,
    return
  }
  func.func @transform_0(%arg0: i32, %arg1: i32) -> (i32, i32, i32, i32) {
    %c0_i32 = arith.constant 0 : i32
    %c0_i32_0 = arith.constant 0 : i32
    %c0_i32_1 = arith.constant 0 : i32
    return %arg0, %arg1, %c0_i32, %c0_i32_0 : i32, i32, i32, i32
  }
  func.func @transform_1(%arg0: i32, %arg1: i32) -> (i32, i32) {
    %c0_i32 = arith.constant 0 : i32
    %c0_i32_0 = arith.constant 0 : i32
    %c0_i32_1 = arith.constant 0 : i32
    return %c0_i32, %c0_i32_0 : i32, i32
  }
  func.func @transform_2(%arg0: i32, %arg1: i32) -> (i32, i32) {
    %c0_i32 = arith.constant 0 : i32
    %c0_i32_0 = arith.constant 0 : i32
    %c0_i32_1 = arith.constant 0 : i32
    return %c0_i32, %c0_i32_0 : i32, i32
  }
  func.func @transform_3(%arg0: i32, %arg1: i32) -> (i32, i32) {
    %c0_i32 = arith.constant 0 : i32
    %c0_i32_0 = arith.constant 0 : i32
    %c0_i32_1 = arith.constant 0 : i32
    return %c0_i32, %c0_i32_0 : i32, i32
  }
  func.func @transform_4(%arg0: i32, %arg1: i32) -> (i32, i32, i32, i32) {
    %c0_i32 = arith.constant 0 : i32
    %c0_i32_0 = arith.constant 0 : i32
    %c0_i32_1 = arith.constant 0 : i32
    return %arg0, %arg1, %c0_i32, %c0_i32_0 : i32, i32, i32, i32
  }
  func.func @transform_5(%arg0: i32, %arg1: i32) -> (i32, i32) {
    %c0_i32 = arith.constant 0 : i32
    %c0_i32_0 = arith.constant 0 : i32
    %c0_i32_1 = arith.constant 0 : i32
    return %c0_i32, %c0_i32_0 : i32, i32
  }
  func.func @transform_6(%arg0: i32, %arg1: i32) -> (i32, i32, i32, i32) {
    %c0_i32 = arith.constant 0 : i32
    %c0_i32_0 = arith.constant 0 : i32
    %c0_i32_1 = arith.constant 0 : i32
    return %arg0, %arg1, %c0_i32, %c0_i32_0 : i32, i32, i32, i32
  }
}

</mosaic_0001>

<bundles_post_ra>
// kernel: up3d_forward.5
= control target key start
LH: loop header
LB: loop body
LE: loop exit
PB: predicated region body
PF: predicated region fallthrough
CT: control target
= control target key end

     0   :  { %s345_s12 = smov 0   ;;  %s390_s0 = inlined_call_operand.vmem [shape: f32[2,8,64], index: 0, kind: input, shape index: {}]   ;;  %s391_s1 = inlined_call_operand.vmem [shape: f32[32,8], index: 1, kind: input, shape index: {}]   ;;  %s392_s2 = inlined_call_operand.vmem [shape: f32[32,1], index: 2, kind: input, shape index: {}]   ;;  %s393_s3 = inlined_call_operand.vmem [shape: f32[2,32,64], index: 3, kind: output, shape index: {}]  }
   0x1 LB: > { %s291_s13 = sadd.s32 4294967295, %s322_s12   ;;  %p295_p0 = scmp.ge.s32.totalorder %s322_s12, 1  ;;  %s322_s12 = sphi %s345_s12, %s13_s12  }
   0x2   : > { %p136_p1 = scmp.lt.s32.totalorder %s322_s12, 3 }
   0x4   : > { %p137_p2 = pnand %p295_p0, %p136_p1 }
   0x5   : > { %p159_p3 = scmp.lt.s32.totalorder (!%p137_p2), %s291_s13, 1 }
   0x6   : > { %140 = sbr.rel (%p137_p2) target bundleno = 160 (0xa0), region = 32 }
   0xb   : > { %v179_v0 = vld [vmem:[%s392_s2 + $0x10] sm:$0xff]  ;;  %v177_v1 = vld [vmem:[%s392_s2] sm:$0xff]  ;;  %s395_s13 = smov (!%p159_p3, %s291_s13), 1  ;;  %v324_v2 = vmov 0   ;;  %v170_v4 = vld [vmem:[%s391_s1 + $0x8] sm:$0xff]  ;;  %vm208_vm0 = vcmask 1043456  }
   0xc   : > { %315 = vset.pattern.permute.xlu1 %v324_v2  ;;  %314 = vset.pattern.permute.xlu0 %v324_v2  ;;  %s296_s18 = sshll.u32 %s395_s13, 3  ;;  %v169_v3 = vld [vmem:[%s391_s1] sm:$0xff]  ;;  %v171_v6 = vld [vmem:[%s391_s1 + $0x10] sm:$0xff]  ;;  %v172_v7 = vld [vmem:[%s391_s1 + $0x18] sm:$0xff]  ;;  %vm201_vm1 = vcmask 64512   ;;  %s303_s7 = sshll.u32 %s395_s13, 5 }
   0xd   : > { %193 = vperm.xlu1 %315, %v179_v0   ;;  %183 = vperm.xlu0 %314, %v177_v1   ;;  %s162_s21 = scalar_lea.vmem %s390_s0, %s296_s18  ;;  %v180_v9 = vld [vmem:[%s392_s2 + $0x18] sm:$0xff]  ;;  %v178_v10 = vld [vmem:[%s392_s2 + $0x8] sm:$0xff]  ;;  %v173_v12 = vpack.c.bf16 %v170_v4, %v169_v3  ;;  %v174_v13 = vpack.c.bf16 %v172_v7, %v171_v6  ;;  %s167_s10 = scalar_lea.vmem %s393_s3, %s303_s7  ;;  %vm231_vm2 = vcmask 523264  }
   0xe   : > { %v175_v5 = vld [vmem:[%s162_s21] sm:$0xff] }
   0xf   : > { %v176_v8 = vpack.c.bf16 %v175_v5, %v175_v5 }
  0x11   : > { %v210_v11 = vsel %vm208_vm0, %v176_v8, 0 }
  0x12   : > { %219 = vmatpush.bf16.msra.mxu0 %v210_v11  ;;  %304 = vmatpush.bf16.msra.mxu1 %v210_v11 }
  0x15   : > { %198 = vperm.xlu1 %315, %v180_v9   ;;  %188 = vperm.xlu0 %314, %v178_v10  }
  0x16   : > { %299 = vmatmul.msk.bf16.vlgmr.msra.gmra.mxu0 %vm201_vm1, %v173_v12  ;;  %300 = vmatmul.msk.bf16.vlgmr.msra.gmra.mxu1 %vm201_vm1, %v174_v13 }
  0x7f   : > { %v194_v14 = vpop.permute.xlu1 %193  ;;  %v184_v15 = vpop.permute.xlu0 %183 }
  0x87   : > { %v199_v20 = vpop.permute.xlu1 %198  ;;  %v189_v21 = vpop.permute.xlu0 %188 }
  0x93   : > { %v221_v16 = vpop.f32.mrf.mxu0  ;;  %v226_v17 = vpop.f32.mrf.mxu1 }
  0x94   : > { %v222_v18 = vadd.f32 %v221_v16, %v184_v15  ;;  %v227_v19 = vadd.f32 %v226_v17, %v194_v14 }
  0x96   : > { %232 = vst.msk [vmem:[%s167_s10] sm:$0xff] %vm231_vm2, %v222_v18 }
  0x97   : > { %234 = vst.msk [vmem:[%s167_s10 + $0x10] sm:$0xff] %vm231_vm2, %v227_v19 }
  0x9b   : > { %v223_v22 = vpop.f32.mrf.mxu0  ;;  %v228_v23 = vpop.f32.mrf.mxu1 }
  0x9c   : > { %v224_v24 = vadd.f32 %v223_v22, %v189_v21  ;;  %v229_v25 = vadd.f32 %v228_v23, %v199_v20 }
  0x9e   : > { %233 = vst.msk [vmem:[%s167_s10 + $0x8] sm:$0xff] %vm231_vm2, %v224_v24 }
  0x9f   : > { %235 = vst.msk [vmem:[%s167_s10 + $0x18] sm:$0xff] %vm231_vm2, %v229_v25 }
  0xa0 PF: > { %s13_s12 = sadd.s32 1, %s322_s12  }
  0xa1   : > { %p10_p4 = scmp.ge.s32.totalorder %s13_s12, 4  }
  0xa3   :  { %12 = sbr.rel (!%p10_p4) target bundleno = 1 (0x1), region = 62 }

// kernel: up3d_forward.7
= control target key start
LH: loop header
LB: loop body
LE: loop exit
PB: predicated region body
PF: predicated region fallthrough
CT: control target
= control target key end

     0   :  { %s537_s18 = smov 0   ;;  %s539_s19 = smov 0   ;;  %s600_s0 = inlined_call_operand.vmem [shape: f32[2,8,8,92], index: 0, kind: input, shape index: {}]   ;;  %s601_s1 = inlined_call_operand.vmem [shape: f32[8,1], index: 1, kind: input, shape index: {}]   ;;  %s602_s2 = inlined_call_operand.vmem [shape: f32[8,1], index: 2, kind: input, shape index: {}]   ;;  %s603_s3 = inlined_call_operand.vmem [shape: f32[8,8], index: 3, kind: input, shape index: {}]   ;;  %s604_s4 = inlined_call_operand.vmem [shape: f32[1,92], index: 4, kind: input, shape index: {}]   ;;  %s605_s5 = inlined_call_operand.vmem [shape: f32[2,8,8,144], index: 5, kind: output, shape index: {}]  }
   0x1   :  { %s541_s20 = smov 0   ;;  %s543_s21 = smov 0  }
   0x2   :  { %s545_s22 = smov 0  }
   0x3 LB: > { %s24_s23 = sadd.s32 1, %s494_s20  ;;  %s27_s24 = sadd.s32 1, %s498_s21  ;;  %s502_s22 = sphi %s545_s22, %s15_s22   ;;  %s498_s21 = sphi %s543_s21, %s609_s21   ;;  %s494_s20 = sphi %s541_s20, %s608_s20   ;;  %s490_s19 = sphi %s539_s19, %s607_s19   ;;  %s486_s18 = sphi %s537_s18, %s606_s18  }
   0x4   : > { %p25_p0 = scmp.ge.s32.totalorder %s24_s23, 8  ;;  %p410_p1 = scmp.ge.s32.totalorder %s502_s22, 1 }
   0x5   : > { %p206_p2 = scmp.lt.s32.totalorder %s502_s22, 17 }
   0x6   : > { %s611_s23 = smov (%p25_p0, %s24_s23), 0  ;;  %s613_s24 = smov (!%p25_p0, %s27_s24), %s498_s21 }
   0x7   : > { %p207_p3 = pnand %p410_p1, %p206_p2  ;;  %p29_p4 = scmp.ge.s32.totalorder %s613_s24, 2 }
   0x8   : > { %p241_p5 = scmp.lt.s32.totalorder (!%p207_p3), %s490_s19, 1  ;;  %p243_p6 = scmp.lt.s32.totalorder (!%p207_p3), %s486_s18, 7 }
   0x9   : > { %s615_s24 = smov (%p29_p4, %s613_s24), 0  ;;  %210 = sbr.rel (%p207_p3) target bundleno = 395 (0x18b), region = 40 }
   0xa   : > { %s506_s26 = smov (!%p207_p3), 26  }
   0xe   : > { %v260_v0 = vld [vmem:[%s601_s1] sm:$0xff]  ;;  %v504_v1 = vmov 0   ;;  %s617_s19 = smov (!%p241_p5, %s490_s19), 1  ;;  %s619_s18 = smov (!%p243_p6, %s486_s18), 7  ;;  %vm283_vm0 = vcmask 1043456   ;;  %vm279_vm1 = vcmask 64512  }
   0xf   : > { %462 = vset.pattern.permute.xlu0 %v504_v1  ;;  %s414_s27 = sshll.u32 %s617_s19, 4  ;;  %s413_s28 = sshll.u32 %s619_s18, 1  ;;  %v267_v2 = vld [vmem:[%s602_s2] sm:$0xff]  ;;  %vm301_vm2 = vcmask 130048   ;;  %v505_v14 = vmov 0.0   ;;  %vm312_vm3 = vcmask 965840  }
  0x10   : > { %263 = vperm.xlu0 %462, %v260_v0   ;;  %s255_s29 = sadd.s32 %s414_s27, %s413_s28  ;;  %s411_s7 = sshll.u32 %s617_s19, 3  ;;  %v276_v10 = vld [vmem:[%s603_s3] sm:$0xff] }
  0x11   : > { %s246_s8 = sadd.s32 %s411_s7, %s619_s18  ;;  %v277_v13 = vpack.c.bf16 %v276_v10, %v276_v10  ;;  %s415_s15 = sshll.u32 %s255_s29, 3  ;;  %v463_v15 = vld [vmem:[%s604_s4] ss:$0 sm:$0xff] }
  0x12   : > { %s412_s9 = sshll.u32 %s246_s8, 3  ;;  %s257_s18 = scalar_lea.vmem %s605_s5, %s415_s15 }
  0x13   : > { %s248_s12 = scalar_lea.vmem %s600_s0, %s412_s9  ;;  %300 = vst [vmem:[%s257_s18] sm:$0xff] %v505_v14 }
  0x14   : > { %v259_v4 = vld [vmem:[%s248_s12] sm:$0xff]  ;;  %302 = vst.msk [vmem:[%s257_s18 + $0x8] sm:$0xff] %vm301_vm2, %v505_v14 }
  0x18   : > { %270 = vperm.xlu0 %462, %v267_v2  }
  0x82   : > { %v264_v3 = vpop.permute.xlu0 %263 }
  0x83   : > { %v266_v5 = vmul.f32 %v264_v3, %v259_v4 }
  0x8a   : > { %v271_v6 = vpop.permute.xlu0 %270 }
  0x8b   : > { %v273_v7 = vadd.f32 %v271_v6, %v266_v5 }
  0x8d   : > { %v274_v8 = vmax.f32 %v273_v7, 0.0 }
  0x8f   : > { %v275_v9 = vmin.f32 %v274_v8, 6.0 }
  0x91   : > { %v278_v11 = vpack.c.bf16 %v275_v9, %v275_v9 }
  0x93   : > { %v285_v12 = vsel %vm283_vm0, %v278_v11, 0 }
  0x94   : > { %294 = vmatpush.bf16.msra.mxu0 %v285_v12 }
  0x97   : > { %416 = vmatmul.msk.bf16.vlgmr.msra.gmra.mxu0 %vm279_vm1, %v277_v13 }
 0x114   : > { %v296_v16 = vpop.f32.mrf.mxu0 }
 0x115   : > { %v307_v17 = vmul.f32 %v463_v15, %v296_v16 }
 0x117   : > { %309 = vrot.lane.b32.xlu1 %v307_v17, %s506_s26 }
 0x11c   : > { %v298_v18 = vpop.f32.mrf.mxu0 }
 0x189   : > { %v310_v19 = vpop.permute.xlu1 %309 }
 0x18a   : > { %313 = vst.msk [vmem:[%s257_s18] sm:$0xff] %vm312_vm3, %v310_v19 }
 0x18b PF: > { %s15_s22 = sadd.s32 1, %s502_s22   ;;  %s606_s18 = smov %s494_s20 }
 0x18c   : > { %p12_p7 = scmp.ge.s32.totalorder %s15_s22, 18   ;;  %s607_s19 = smov %s498_s21 }
 0x18d   : > { %s608_s20 = smov %s611_s23  ;;  %s609_s21 = smov %s615_s24 }
 0x18e   :  { %14 = sbr.rel (!%p12_p7) target bundleno = 3 (0x3), region = 70 }

// kernel: up3d_forward.6
= control target key start
LH: loop header
LB: loop body
LE: loop exit
PB: predicated region body
PF: predicated region fallthrough
CT: control target
= control target key end

     0   :  { %s1058_s15 = smov 0   ;;  %s1060_s16 = smov 0   ;;  %s1359_s0 = inlined_call_operand.vmem [shape: f32[2,8,8,144], index: 0, kind: input, shape index: {}]   ;;  %s1360_s1 = inlined_call_operand.vmem [shape: f32[27,8,1], index: 1, kind: input, shape index: {}]   ;;  %s1361_s2 = inlined_call_operand.vmem [shape: f32[1,92], index: 2, kind: input, shape index: {}]   ;;  %s1362_s3 = inlined_call_operand.vmem [shape: f32[2,8,8,92], index: 3, kind: output, shape index: {0}]   ;;  %s1363_s4 = inlined_call_operand.vmem [shape: f32[2,8,8,2], index: 4, kind: output, shape index: {1}]  }
   0x1   :  { %s1062_s17 = smov 0   ;;  %s1064_s18 = smov 0  }
   0x2   :  { %s1066_s19 = smov 0  }
   0x3 LB: > { %s24_s20 = sadd.s32 1, %s1014_s17  ;;  %s27_s21 = sadd.s32 1, %s1018_s18  ;;  %s1022_s19 = sphi %s1066_s19, %s15_s19   ;;  %s1018_s18 = sphi %s1064_s18, %s1368_s18   ;;  %s1014_s17 = sphi %s1062_s17, %s1367_s17   ;;  %s1010_s16 = sphi %s1060_s16, %s1366_s16   ;;  %s1006_s15 = sphi %s1058_s15, %s1365_s15  }
   0x4   : > { %p25_p0 = scmp.ge.s32.totalorder %s24_s20, 8  ;;  %p862_p1 = scmp.ge.s32.totalorder %s1022_s19, 1 }
   0x5   : > { %p181_p2 = scmp.lt.s32.totalorder %s1022_s19, 17 }
   0x6   : > { %s1370_s20 = smov (%p25_p0, %s24_s20), 0  ;;  %s1372_s21 = smov (!%p25_p0, %s27_s21), %s1018_s18 }
   0x7   : > { %p182_p3 = pnand %p862_p1, %p181_p2  ;;  %p29_p4 = scmp.ge.s32.totalorder %s1372_s21, 2 }
   0x8   : > { %s1093_s22 = sadd.s32 (!%p182_p3), 4294967294, %s1006_s15  ;;  %p395_p8 = scmp.ge.s32.totalorder (!%p182_p3), %s1006_s15, 0 }
   0x9   : > { %s1374_s21 = smov (%p29_p4, %s1372_s21), 0  ;;  %185 = sbr.rel (%p182_p3) target bundleno = 614 (0x266), region = 32 }
   0xa   : > { %p240_p5 = scmp.ge.s32.totalorder (!%p182_p3), %s1093_s22, 0  ;;  %p241_p6 = scmp.lt.s32.totalorder (!%p182_p3), %s1093_s22, 8 }
   0xb   : > { %p396_p9 = scmp.lt.s32.totalorder (!%p182_p3), %s1006_s15, 8  ;;  %p218_p11 = scmp.lt.s32.totalorder (!%p182_p3), %s1010_s16, 1 }
   0xc   : > { %p242_p7 = pnand (!%p182_p3), %p241_p6, %p240_p5  ;;  %s1125_s14 = sadd.s32 (!%p182_p3), 2, %s1006_s15 }
   0xd   : > { %p1108_p10 = pnand (!%p182_p3), %p396_p9, %p395_p8  ;;  %p556_p12 = scmp.gt.s32.totalorder (!%p182_p3), %s1125_s14, 0 }
   0xe   : > { %v1024_v0 = vmov 0   ;;  %s869_s23 = scalar_select %p242_p7, 0, 1  ;;  %v879_v1 = vld [vmem:[%s1360_s1 + $0x18] sm:$0xff]  ;;  %v878_v2 = vld [vmem:[%s1360_s1 + $0x10] sm:$0xff]  ;;  %v254_v3 = vld [vmem:[%s1360_s1] sm:$0xff] }
   0xf   : > { %982 = vset.pattern.permute.xlu2 %v1024_v0  ;;  %981 = vset.pattern.permute.xlu1 %v1024_v0  ;;  %v882_v8 = vld [vmem:[%s1360_s1 + $0x30] sm:$0xff]  ;;  %v880_v9 = vld [vmem:[%s1360_s1 + $0x20] sm:$0xff]  ;;  %s885_s10 = scalar_select %p1108_p10, 0, 1  ;;  %v877_v10 = vld [vmem:[%s1360_s1 + $0x8] sm:$0xff]  ;;  %vm351_vm0 = vcmask 654336  }
  0x10   : > { %980 = vset.pattern.permute.xlu0 %v1024_v0  ;;  %s245_s24 = scvt.s32.f32 %s869_s23  ;;  %s1376_s16 = smov (!%p218_p11, %s1010_s16), 1  ;;  %v883_v14 = vld [vmem:[%s1360_s1 + $0x38] sm:$0xff]  ;;  %v894_v16 = vld [vmem:[%s1360_s1 + $0x50] sm:$0xff]  ;;  %v881_v17 = vld [vmem:[%s1360_s1 + $0x28] sm:$0xff]  ;;  %vm371_vm1 = vcmask 637952   ;;  %vm391_vm2 = vcmask 621568  }
  0x11   : > { %s400_s13 = scvt.s32.f32 %s885_s10  ;;  %p903_p13 = scmp.lt.s32.totalorder %s1125_s14, 7  ;;  %v895_v21 = vld [vmem:[%s1360_s1 + $0x58] sm:$0xff]  ;;  %v897_v22 = vld [vmem:[%s1360_s1 + $0x68] sm:$0xff]  ;;  %v884_v23 = vld [vmem:[%s1360_s1 + $0x40] sm:$0xff]  ;;  %vm709_vm3 = vcmask 752640   ;;  %vm721_vm4 = vcmask 7168  }
  0x12   : > { %v255_v4 = vstv %s245_s24  ;;  %s557_s27 = scalar_select %p556_p12, %s1125_s14, 0  ;;  %v898_v27 = vld [vmem:[%s1360_s1 + $0x70] sm:$0xff]  ;;  %v900_v28 = vld [vmem:[%s1360_s1 + $0x80] sm:$0xff]  ;;  %v901_v33 = vld [vmem:[%s1360_s1 + $0x88] sm:$0xff]  ;;  %vm723_vm5 = vcmask 15368  }
  0x13   : > { %v293_v5 = vmul.f32 %v879_v1, %v255_v4  ;;  %v279_v6 = vmul.f32 %v878_v2, %v255_v4  ;;  %v256_v7 = vmul.f32 %v255_v4, %v254_v3  ;;  %v337_v11 = vmul.f32 %v882_v8, %v255_v4  ;;  %s921_s30 = sshll.u32 %s1376_s16, 7  ;;  %p550_p0 = scmp.ge.s32.totalorder %s1125_s14, 0  ;;  %v896_v29 = vld [vmem:[%s1360_s1 + $0x60] sm:$0xff]  ;;  %v899_v36 = vld [vmem:[%s1360_s1 + $0x78] sm:$0xff]  ;;  %v913_v40 = vld [vmem:[%s1360_s1 + $0xa8] sm:$0xff] }
  0x14   : > { %v307_v12 = vmul.f32 %v880_v9, %v255_v4  ;;  %v265_v13 = vmul.f32 %v877_v10, %v255_v4  ;;  %v1134_v15 = vstv %s400_s13  ;;  %v357_v18 = vmul.f32 %v883_v14, %v255_v4  ;;  %s1378_s27 = smov (!%p903_p13, %s557_s27), 7  ;;  %s1149_s7 = scalar_lea.vmem %s1359_s0, %s921_s30  ;;  %v912_v35 = vld [vmem:[%s1360_s1 + $0xa0] sm:$0xff]  ;;  %v915_v41 = vld [vmem:[%s1360_s1 + $0xb8] sm:$0xff]  ;;  %v918_v47 = vld [vmem:[%s1360_s1 + $0xd0] sm:$0xff] }
  0x15   : > { %296 = vperm.xlu2 %982, %v293_v5   ;;  %282 = vperm.xlu1 %981, %v279_v6   ;;  %v422_v19 = vmul.f32 %v894_v16, %v1134_v15  ;;  %v321_v20 = vmul.f32 %v881_v17, %v255_v4  ;;  %s930_s8 = sshll.u32 %s1378_s27, 4  ;;  %p551_p1 = scmp.lt.s32.totalorder %s1125_s14, 8  ;;  %v436_v24 = vmul.f32 %v895_v21, %v1134_v15  ;;  %v911_v42 = vld [vmem:[%s1360_s1 + $0x98] sm:$0xff]  ;;  %v916_v46 = vld [vmem:[%s1360_s1 + $0xc0] sm:$0xff]  ;;  %v914_v48 = vld [vmem:[%s1360_s1 + $0xb0] sm:$0xff] }
  0x16   : > { %259 = vperm.xlu0 %980, %v256_v7   ;;  %s1152_s9 = scalar_lea.vmem %s1149_s7, %s930_s8  ;;  %v464_v25 = vmul.f32 %v897_v22, %v1134_v15  ;;  %v377_v26 = vmul.f32 %v884_v23, %v255_v4  ;;  %v478_v30 = vmul.f32 %v898_v27, %v1134_v15  ;;  %v513_v31 = vmul.f32 %v900_v28, %v1134_v15  ;;  %v917_v52 = vld [vmem:[%s1360_s1 + $0xc8] sm:$0xff]  ;;  %p246_p3 = scmp.gt.s32.totalorder %s1093_s22, 0 }
  0x17   : > { %p552_p2 = pnand %p551_p1, %p550_p0  ;;  %v450_v32 = vmul.f32 %v896_v29, %v1134_v15  ;;  %v532_v37 = vmul.f32 %v901_v33, %v1134_v15  ;;  %v494_v39 = vmul.f32 %v899_v36, %v1134_v15  ;;  %v893_v54 = vld [vmem:[%s1360_s1 + $0x48] sm:$0xff]  ;;  %p870_p4 = scmp.lt.s32.totalorder %s1093_s22, 7 }
  0x18   : > { %v412_v55 = vmul.f32 %v893_v54, %v1134_v15  ;;  %s247_s23 = scalar_select %p246_p3, %s1093_s22, 0  ;;  %v646_v54 = vld [vmem:[%s1152_s9 + $0x8] sm:$0xff] }
  0x19   : > { %s902_s14 = scalar_select %p552_p2, 0, 1 }
  0x1a   : > { %s1380_s23 = smov (!%p870_p4, %s247_s23), 7  ;;  %p401_p5 = scmp.gt.s32.totalorder %s1006_s15, 0 }
  0x1b   : > { %s555_s5 = scvt.s32.f32 %s902_s14  ;;  %s924_s24 = sshll.u32 %s1380_s23, 4 }
  0x1c   : > { %s252_s25 = scalar_lea.vmem %s1149_s7, %s924_s24  ;;  %p225_p6 = scmp.lt.s32.totalorder %s1006_s15, 7 }
  0x1d   : > { %340 = vperm.xlu2 %982, %v337_v11   ;;  %310 = vperm.xlu1 %981, %v307_v12   ;;  %v1182_v34 = vstv %s555_s5  ;;  %v1229_v57 = vld [vmem:[%s252_s25] sm:$0xff]  ;;  %v1233_v59 = vld [vmem:[%s252_s25 + $0x8] sm:$0xff]  ;;  %s402_s26 = scalar_select %p401_p5, %s1006_s15, 0 }
  0x1e   : > { %268 = vperm.xlu0 %980, %v265_v13   ;;  %v591_v38 = vmul.f32 %v912_v35, %v1182_v34  ;;  %v605_v43 = vmul.f32 %v913_v40, %v1182_v34  ;;  %v633_v44 = vmul.f32 %v915_v41, %v1182_v34  ;;  %v577_v45 = vmul.f32 %v911_v42, %v1182_v34  ;;  %s1025_s28 = smov 124   ;;  %s1027_s14 = smov 126  }
  0x1f   : > { %v649_v49 = vmul.f32 %v916_v46, %v1182_v34  ;;  %v687_v50 = vmul.f32 %v918_v47, %v1182_v34  ;;  %v619_v51 = vmul.f32 %v914_v48, %v1182_v34  ;;  %v668_v53 = vmul.f32 %v917_v52, %v1182_v34  ;;  %s1382_s26 = smov (!%p225_p6, %s402_s26), 7  ;;  %s1028_s29 = smov 102  }
  0x20   : > { %s927_s22 = sshll.u32 %s1382_s26, 4  ;;  %s1029_s30 = smov 78  }
  0x21   : > { %s1246_s27 = scalar_lea.vmem %s1149_s7, %s927_s22  ;;  %s1026_s7 = smov 100  }
  0x22   : > { %v1249_v2 = vld [vmem:[%s1246_s27] sm:$0xff]  ;;  %s1030_s5 = smov 104   ;;  %v491_v23 = vld [vmem:[%s1246_s27 + $0x8] sm:$0xff]  ;;  %s1031_s6 = smov 80  }
  0x23   : > { %s1032_s8 = smov 76   ;;  %s1384_s15 = smov (!%p225_p6, %s1006_s15), 7 }
  0x25   : > { %360 = vperm.xlu2 %982, %v357_v18   ;;  %425 = vperm.xlu1 %981, %v422_v19  }
  0x26   : > { %324 = vperm.xlu0 %980, %v321_v20  }
  0x2d   : > { %439 = vperm.xlu2 %982, %v436_v24   ;;  %467 = vperm.xlu1 %981, %v464_v25  }
  0x2e   : > { %380 = vperm.xlu0 %980, %v377_v26  }
  0x35   : > { %481 = vperm.xlu2 %982, %v478_v30   ;;  %516 = vperm.xlu1 %981, %v513_v31  }
  0x36   : > { %453 = vperm.xlu0 %980, %v450_v32  }
  0x3d   : > { %535 = vperm.xlu2 %982, %v532_v37   ;;  %594 = vperm.xlu1 %981, %v591_v38   ;;  %v910_v38 = vld [vmem:[%s1360_s1 + $0x90] sm:$0xff] }
  0x3e   : > { %497 = vperm.xlu0 %980, %v494_v39   ;;  %v1294_v39 = vld [vmem:[%s1152_s9] sm:$0xff]  ;;  %v567_v40 = vmul.f32 %v910_v38, %v1182_v34  ;;  %s865_s9 = sshll.u32 %s1376_s16, 3 }
  0x3f   : > { %s228_s12 = sadd.s32 %s865_s9, %s1384_s15 }
  0x40   : > { %s866_s13 = sshll.u32 %s228_s12, 3 }
  0x41   : > { %s230_s26 = scalar_lea.vmem %s1362_s3, %s866_s13  ;;  %s238_s27 = scalar_lea.vmem %s1363_s4, %s866_s13 }
  0x45   : > { %608 = vperm.xlu2 %982, %v605_v43   ;;  %636 = vperm.xlu1 %981, %v633_v44  }
  0x46   : > { %580 = vperm.xlu0 %980, %v577_v45  }
  0x4d   : > { %652 = vperm.xlu2 %982, %v649_v49   ;;  %690 = vperm.xlu1 %981, %v687_v50  }
  0x4e   : > { %622 = vperm.xlu0 %980, %v619_v51  }
  0x56   : > { %671 = vperm.xlu0 %980, %v668_v53  }
  0x5e   : > { %415 = vperm.xlu0 %980, %v412_v55  }
  0x6f   : > { %v297_v56 = vpop.permute.xlu2 %296 }
  0x70   : > { %v299_v58 = vmul.f32 %v297_v56, %v1229_v57 }
  0x77   : > { %v341_v60 = vpop.permute.xlu2 %340 }
  0x78   : > { %v343_v61 = vmul.f32 %v341_v60, %v1229_v57  ;;  %v344_v62 = vmul.f32 %v341_v60, %v1233_v59 }
  0x7f   : > { %v361_v63 = vpop.permute.xlu2 %360 }
  0x80   : > { %v363_v0 = vmul.f32 %v361_v63, %v1229_v57  ;;  %v1243_v1 = vmul.f32 %v361_v63, %v1233_v59 }
  0x87   : > { %v440_v3 = vpop.permute.xlu2 %439  ;;  %v283_v4 = vpop.permute.xlu1 %282 }
  0x88   : > { %v442_v5 = vmul.f32 %v440_v3, %v1249_v2  ;;  %v260_v6 = vpop.permute.xlu0 %259  ;;  %v285_v22 = vmul.f32 %v283_v4, %v1229_v57 }
  0x89   : > { %v1253_v7 = vmul.f32 %v260_v6, %v1229_v57 }
  0x8a   : > { %444 = vrot.lane.b32.xlu2 %v442_v5, %s1025_s28 }
  0x8f   : > { %v482_v8 = vpop.permute.xlu2 %481  ;;  %v311_v9 = vpop.permute.xlu1 %310 }
  0x90   : > { %v484_v10 = vmul.f32 %v482_v8, %v1249_v2  ;;  %v269_v11 = vpop.permute.xlu0 %268  ;;  %v313_v27 = vmul.f32 %v311_v9, %v1229_v57 }
  0x91   : > { %v271_v28 = vmul.f32 %v269_v11, %v1229_v57 }
  0x92   : > { %486 = vrot.lane.b32.xlu2 %v484_v10, %s1026_s7 }
  0x97   : > { %v426_v12 = vpop.permute.xlu1 %425  ;;  %v536_v32 = vpop.permute.xlu2 %535 }
  0x98   : > { %v428_v13 = vmul.f32 %v426_v12, %v1249_v2  ;;  %v325_v14 = vpop.permute.xlu0 %324  ;;  %v539_v33 = vmul.f32 %v536_v32, %v491_v23  ;;  %v538_v42 = vmul.f32 %v536_v32, %v1249_v2 }
  0x99   : > { %v327_v30 = vmul.f32 %v325_v14, %v1229_v57 }
  0x9a   : > { %430 = vrot.lane.b32.xlu1 %v428_v13, %s1027_s14 }
  0x9f   : > { %v468_v15 = vpop.permute.xlu1 %467  ;;  %v609_v44 = vpop.permute.xlu2 %608 }
  0xa0   : > { %v470_v16 = vmul.f32 %v468_v15, %v1249_v2  ;;  %v381_v17 = vpop.permute.xlu0 %380  ;;  %v611_v47 = vmul.f32 %v609_v44, %v1294_v39 }
  0xa1   : > { %v384_v31 = vmul.f32 %v381_v17, %v1233_v59  ;;  %v383_v35 = vmul.f32 %v381_v17, %v1229_v57 }
  0xa2   : > { %472 = vrot.lane.b32.xlu1 %v470_v16, %s1028_s29 }
  0xa7   : > { %v517_v18 = vpop.permute.xlu1 %516  ;;  %v653_v49 = vpop.permute.xlu2 %652 }
  0xa8   : > { %v519_v19 = vmul.f32 %v517_v18, %v1249_v2  ;;  %v454_v20 = vpop.permute.xlu0 %453  ;;  %v520_v29 = vmul.f32 %v517_v18, %v491_v23  ;;  %v655_v51 = vmul.f32 %v653_v49, %v1294_v39  ;;  %v656_v56 = vmul.f32 %v653_v49, %v646_v54 }
  0xa9   : > { %v456_v21 = vmul.f32 %v454_v20, %v1249_v2 }
  0xaa   : > { %523 = vrot.lane.b32.xlu2 %v519_v19, %s1029_s30 }
  0xab   : > { %458 = vrot.lane.b32.xlu0 %v456_v21, %s1030_s5 }
  0xaf   : > { %v595_v37 = vpop.permute.xlu1 %594 }
  0xb0   : > { %v498_v24 = vpop.permute.xlu0 %497  ;;  %v597_v41 = vmul.f32 %v595_v37, %v1294_v39 }
  0xb1   : > { %v500_v25 = vmul.f32 %v498_v24, %v1249_v2  ;;  %v501_v26 = vmul.f32 %v498_v24, %v491_v23 }
  0xb2   : > { %287 = vrot.lane.b32.xlu2 %v285_v22, %s1025_s28 }
  0xb3   : > { %504 = vrot.lane.b32.xlu0 %v500_v25, %s1031_s6  ;;  %506 = vrot.lane.b32.xlu1 %v501_v26, %s1031_s6 }
  0xb7   : > { %v637_v45 = vpop.permute.xlu1 %636 }
  0xb8   : > { %v581_v36 = vpop.permute.xlu0 %580  ;;  %v639_v46 = vmul.f32 %v637_v45, %v1294_v39 }
  0xb9   : > { %v583_v48 = vmul.f32 %v581_v36, %v1294_v39 }
  0xba   : > { %315 = vrot.lane.b32.xlu2 %v313_v27, %s1028_s29 }
  0xbb   : > { %525 = vrot.lane.b32.xlu0 %v520_v29, %s1029_s30  ;;  %273 = vrot.lane.b32.xlu1 %v271_v28, %s1027_s14 }
  0xbf   : > { %v691_v53 = vpop.permute.xlu1 %690 }
  0xc0   : > { %v623_v43 = vpop.permute.xlu0 %622  ;;  %v694_v55 = vmul.f32 %v691_v53, %v646_v54 }
  0xc1   : > { %v625_v52 = vmul.f32 %v623_v43, %v1294_v39 }
  0xc2   : > { %367 = vrot.lane.b32.xlu2 %v363_v0, %s1029_s30 }
  0xc3   : > { %301 = vrot.lane.b32.xlu0 %v299_v58, %s1030_s5  ;;  %329 = vrot.lane.b32.xlu1 %v327_v30, %s1026_s7  ;;  %v693_v58 = vmul.f32 %v691_v53, %v1294_v39 }
  0xc8   : > { %v672_v34 = vpop.permute.xlu0 %671 }
  0xc9   : > { %v674_v50 = vmul.f32 %v672_v34, %v1294_v39  ;;  %v675_v57 = vmul.f32 %v672_v34, %v646_v54 }
  0xca   : > { %389 = vrot.lane.b32.xlu2 %v384_v31, %s1032_s8 }
  0xcb   : > { %347 = vrot.lane.b32.xlu0 %v343_v61, %s1031_s6  ;;  %349 = vrot.lane.b32.xlu1 %v344_v62, %s1031_s6 }
  0xd0   : > { %v416_v63 = vpop.permute.xlu0 %415 }
  0xd1   : > { %v418_v28 = vmul.f32 %v416_v63, %v1249_v2 }
  0xd2   : > { %544 = vrot.lane.b32.xlu2 %v539_v33, %s1032_s8 }
  0xd3   : > { %369 = vrot.lane.b32.xlu0 %v1243_v1, %s1029_s30  ;;  %387 = vrot.lane.b32.xlu1 %v383_v35, %s1032_s8 }
  0xda   : > { %599 = vrot.lane.b32.xlu2 %v597_v41, %s1025_s28 }
  0xdb   : > { %570 = vperm.xlu0 %980, %v567_v40   ;;  %542 = vrot.lane.b32.xlu1 %v538_v42, %s1032_s8 }
  0xe2   : > { %641 = vrot.lane.b32.xlu2 %v639_v46, %s1026_s7 }
  0xe3   : > { %613 = vrot.lane.b32.xlu0 %v611_v47, %s1030_s5  ;;  %585 = vrot.lane.b32.xlu1 %v583_v48, %s1027_s14 }
  0xe4   : > { %v445_v59 = vpop.permute.xlu2 %444 }
  0xea   : > { %678 = vrot.lane.b32.xlu2 %v674_v50, %s1029_s30 }
  0xeb   : > { %659 = vrot.lane.b32.xlu0 %v655_v51, %s1031_s6  ;;  %627 = vrot.lane.b32.xlu1 %v625_v52, %s1028_s29 }
  0xec   : > { %v487_v60 = vpop.permute.xlu2 %486 }
  0xf2   : > { %699 = vrot.lane.b32.xlu2 %v694_v55, %s1032_s8 }
  0xf3   : > { %680 = vrot.lane.b32.xlu0 %v675_v57, %s1029_s30  ;;  %661 = vrot.lane.b32.xlu1 %v656_v56, %s1031_s6 }
  0xfb   : > { %697 = vrot.lane.b32.xlu1 %v693_v58, %s1032_s8 }
 0x104   : > { %v524_v61 = vpop.permute.xlu2 %523 }
 0x10c   : > { %v431_v62 = vpop.permute.xlu1 %430  ;;  %v288_v0 = vpop.permute.xlu2 %287 }
 0x114   : > { %v473_v1 = vpop.permute.xlu1 %472  ;;  %v316_v6 = vpop.permute.xlu2 %315 }
 0x11c   : > { %v368_v10 = vpop.permute.xlu2 %367 }
 0x11d   : > { %v459_v3 = vpop.permute.xlu0 %458 }
 0x124   : > { %v390_v15 = vpop.permute.xlu2 %389 }
 0x125   : > { %v505_v4 = vpop.permute.xlu0 %504  ;;  %v507_v5 = vpop.permute.xlu1 %506 }
 0x126   : > { %v508_v43 = vsel %vm351_vm0, %v505_v4, %v507_v5 }
 0x12c   : > { %v545_v22 = vpop.permute.xlu2 %544 }
 0x12d   : > { %v526_v8 = vpop.permute.xlu0 %525  ;;  %v274_v9 = vpop.permute.xlu1 %273 }
 0x12e   : > { %v276_v11 = vadd.f32 %v274_v9, %v1253_v7  ;;  %v527_v45 = vsel %vm371_vm1, %v524_v61, %v526_v8 }
 0x130   : > { %v290_v14 = vadd.f32 %v288_v0, %v276_v11 }
 0x134   : > { %v600_v35 = vpop.permute.xlu2 %599 }
 0x135   : > { %v302_v12 = vpop.permute.xlu0 %301  ;;  %v330_v13 = vpop.permute.xlu1 %329 }
 0x136   : > { %v304_v16 = vadd.f32 %v302_v12, %v290_v14 }
 0x138   : > { %v318_v19 = vadd.f32 %v316_v6, %v304_v16 }
 0x13a   : > { %v332_v21 = vadd.f32 %v330_v13, %v318_v19 }
 0x13c   : > { %v642_v2 = vpop.permute.xlu2 %641 }
 0x13d   : > { %v348_v17 = vpop.permute.xlu0 %347  ;;  %v350_v18 = vpop.permute.xlu1 %349 }
 0x13e   : > { %v352_v20 = vsel %vm351_vm0, %v348_v17, %v350_v18 }
 0x13f   : > { %v354_v23 = vadd.f32 %v352_v20, %v332_v21 }
 0x144   : > { %v679_v54 = vpop.permute.xlu2 %678 }
 0x145   : > { %v370_v24 = vpop.permute.xlu0 %369  ;;  %v388_v25 = vpop.permute.xlu1 %387 }
 0x146   : > { %v372_v7 = vsel %vm371_vm1, %v368_v10, %v370_v24  ;;  %v392_v27 = vsel %vm391_vm2, %v388_v25, %v390_v15 }
 0x147   : > { %v374_v26 = vadd.f32 %v372_v7, %v354_v23 }
 0x149   : > { %v394_v29 = vadd.f32 %v392_v27, %v374_v26 }
 0x14b   : > { %v419_v30 = vadd.f32 %v418_v28, %v394_v29 }
 0x14d   : > { %v433_v31 = vadd.f32 %v431_v62, %v419_v30  ;;  %v571_v32 = vpop.permute.xlu0 %570  ;;  %v543_v33 = vpop.permute.xlu1 %542 }
 0x14e   : > { %v546_v47 = vsel %vm391_vm2, %v543_v33, %v545_v22  ;;  %v573_v48 = vmul.f32 %v571_v32, %v1294_v39  ;;  %v700_v62 = vpop.permute.xlu2 %699 }
 0x14f   : > { %v447_v36 = vadd.f32 %v445_v59, %v433_v31 }
 0x151   : > { %v461_v37 = vadd.f32 %v459_v3, %v447_v36 }
 0x153   : > { %v475_v38 = vadd.f32 %v473_v1, %v461_v37  ;;  %v983_v1 = vld [vmem:[%s1361_s2] ss:$0 sm:$0xff] }
 0x155   : > { %v489_v40 = vadd.f32 %v487_v60, %v475_v38  ;;  %v614_v41 = vpop.permute.xlu0 %613  ;;  %v586_v42 = vpop.permute.xlu1 %585 }
 0x157   : > { %v510_v44 = vadd.f32 %v508_v43, %v489_v40 }
 0x159   : > { %v529_v46 = vadd.f32 %v527_v45, %v510_v44 }
 0x15b   : > { %v548_v34 = vadd.f32 %v546_v47, %v529_v46 }
 0x15d   : > { %v574_v49 = vadd.f32 %v573_v48, %v548_v34  ;;  %v628_v50 = vpop.permute.xlu1 %627  ;;  %v660_v52 = vpop.permute.xlu0 %659 }
 0x15f   : > { %v588_v51 = vadd.f32 %v586_v42, %v574_v49 }
 0x161   : > { %v602_v53 = vadd.f32 %v600_v35, %v588_v51 }
 0x163   : > { %v616_v55 = vadd.f32 %v614_v41, %v602_v53 }
 0x165   : > { %v630_v56 = vadd.f32 %v628_v50, %v616_v55  ;;  %v662_v57 = vpop.permute.xlu1 %661  ;;  %v681_v60 = vpop.permute.xlu0 %680 }
 0x166   : > { %v663_v59 = vsel %vm351_vm0, %v660_v52, %v662_v57  ;;  %v682_v39 = vsel %vm371_vm1, %v679_v54, %v681_v60 }
 0x167   : > { %v644_v58 = vadd.f32 %v642_v2, %v630_v56 }
 0x169   : > { %v665_v61 = vadd.f32 %v663_v59, %v644_v58 }
 0x16b   : > { %v684_v0 = vadd.f32 %v682_v39, %v665_v61 }
 0x16d   : > { %v698_v63 = vpop.permute.xlu1 %697 }
 0x16e   : > { %v701_v3 = vsel %vm391_vm2, %v698_v63, %v700_v62 }
 0x16f   : > { %v703_v4 = vadd.f32 %v701_v3, %v684_v0 }
 0x171   : > { %v708_v5 = vmul.f32 %v983_v1, %v703_v4  ;;  %720 = vst.msk [vmem:[%s230_s26] sm:$0xff] %vm709_vm3, %v703_v4 }
 0x173   : > { %v710_v6 = vsel %vm709_vm3, %v708_v5, 0.0 }
 0x174   : > { %711 = vadd.xlane.f32.xlu0 %v710_v6 }
 0x1e7   : > { %v712_v8 = vpop.xlane.xlu0 %711 }
 0x1e8   : > { %v713_v9 = vmul.f32 0.015625, %v712_v8 }
 0x1ea   : > { %v714_v10 = vsub.f32 %v703_v4, %v713_v9  ;;  %722 = vst.msk [vmem:[%s238_s27] sm:$0xff] %vm721_vm4, %v713_v9 }
 0x1ec   : > { %v715_v11 = vmul.f32 %v983_v1, %v714_v10 }
 0x1ee   : > { %v716_v12 = vmul.f32 %v715_v11, %v715_v11 }
 0x1f0   : > { %v717_v13 = vsel %vm709_vm3, %v716_v12, 0.0 }
 0x1f1   : > { %718 = vadd.xlane.f32.xlu1 %v717_v13 }
 0x264   : > { %v719_v14 = vpop.xlane.xlu1 %718 }
 0x265   : > { %724 = vst.msk [vmem:[%s238_s27] sm:$0xff] %vm723_vm5, %v719_v14 }
 0x266 PF: > { %s15_s19 = sadd.s32 1, %s1022_s19   ;;  %s1365_s15 = smov %s1014_s17 }
 0x267   : > { %p12_p7 = scmp.ge.s32.totalorder %s15_s19, 18   ;;  %s1366_s16 = smov %s1018_s18 }
 0x268   : > { %s1367_s17 = smov %s1370_s20  ;;  %s1368_s18 = smov %s1374_s21 }
 0x269   :  { %14 = sbr.rel (!%p12_p7) target bundleno = 3 (0x3), region = 103 }

// kernel: up3d_forward.9
= control target key start
LH: loop header
LB: loop body
LE: loop exit
PB: predicated region body
PF: predicated region fallthrough
CT: control target
= control target key end

     0   :  { %s630_s21 = smov 0   ;;  %s632_s22 = smov 0   ;;  %s700_s0 = inlined_call_operand.vmem [shape: f32[2,8,8,92], index: 0, kind: input, shape index: {}]   ;;  %s701_s1 = inlined_call_operand.vmem [shape: f32[8,1], index: 1, kind: input, shape index: {}]   ;;  %s702_s2 = inlined_call_operand.vmem [shape: f32[8,1], index: 2, kind: input, shape index: {}]   ;;  %s703_s3 = inlined_call_operand.vmem [shape: f32[4,8], index: 3, kind: input, shape index: {}]   ;;  %s704_s4 = inlined_call_operand.vmem [shape: f32[2,8,8,144], index: 4, kind: input, shape index: {}]   ;;  %s705_s5 = inlined_call_operand.vmem [shape: f32[4,8], index: 5, kind: input, shape index: {}]   ;;  %s706_s6 = inlined_call_operand.vmem [shape: f32[2,8,4,92], index: 6, kind: output, shape index: {}]  }
   0x1   :  { %s634_s23 = smov 0   ;;  %s636_s24 = smov 0  }
   0x2   :  { %s638_s25 = smov 0  }
   0x3 LB: > { %s25_s26 = sadd.s32 1, %s583_s23  ;;  %s28_s27 = sadd.s32 1, %s587_s24  ;;  %s591_s25 = sphi %s638_s25, %s16_s25   ;;  %s587_s24 = sphi %s636_s24, %s710_s24   ;;  %s583_s23 = sphi %s634_s23, %s709_s23   ;;  %s579_s22 = sphi %s632_s22, %s708_s22   ;;  %s575_s21 = sphi %s630_s21, %s707_s21  }
   0x4   : > { %p26_p0 = scmp.ge.s32.totalorder %s25_s26, 8  ;;  %p498_p1 = scmp.ge.s32.totalorder %s591_s25, 1 }
   0x5   : > { %p247_p2 = scmp.lt.s32.totalorder %s591_s25, 17 }
   0x6   : > { %s712_s26 = smov (%p26_p0, %s25_s26), 0  ;;  %s714_s27 = smov (!%p26_p0, %s28_s27), %s587_s24 }
   0x7   : > { %p248_p3 = pnand %p498_p1, %p247_p2  ;;  %p30_p4 = scmp.ge.s32.totalorder %s714_s27, 2 }
   0x8   : > { %p292_p5 = scmp.lt.s32.totalorder (!%p248_p3), %s579_s22, 1  ;;  %p294_p6 = scmp.lt.s32.totalorder (!%p248_p3), %s575_s21, 7 }
   0x9   : > { %s716_s27 = smov (%p30_p4, %s714_s27), 0  ;;  %251 = sbr.rel (%p248_p3) target bundleno = 285 (0x11d), region = 44 }
   0xa   : > { %s594_s17 = smov (!%p248_p3), 102  }
   0xe   : > { %v319_v0 = vld [vmem:[%s701_s1] sm:$0xff]  ;;  %v593_v1 = vmov 0   ;;  %s718_s22 = smov (!%p292_p5, %s579_s22), 1  ;;  %s720_s21 = smov (!%p294_p6, %s575_s21), 7  ;;  %vm349_vm0 = vcmask 1043456   ;;  %vm345_vm1 = vcmask 64512  }
   0xf   : > { %552 = vset.pattern.permute.xlu0 %v593_v1  ;;  %s502_s30 = sshll.u32 %s718_s22, 4  ;;  %s499_s7 = sshll.u32 %s718_s22, 3  ;;  %v326_v2 = vld [vmem:[%s702_s2] sm:$0xff]  ;;  %vm385_vm2 = vcmask 748544  }
  0x10   : > { %322 = vperm.xlu0 %552, %v319_v0   ;;  %s501_s8 = sshll.u32 %s720_s21, 1  ;;  %s663_s9 = sadd.s32 %s499_s7, %s720_s21  ;;  %v339_v9 = vld [vmem:[%s705_s5] sm:$0xf] }
  0x11   : > { %s306_s10 = sadd.s32 %s502_s30, %s501_s8  ;;  %s500_s18 = sshll.u32 %s663_s9, 3  ;;  %v340_v14 = vpack.c.bf16 %v339_v9, %v339_v9  ;;  %v335_v16 = vld [vmem:[%s703_s3] sm:$0xf] }
  0x12   : > { %s503_s13 = sshll.u32 %s306_s10, 3  ;;  %s299_s21 = scalar_lea.vmem %s700_s0, %s500_s18  ;;  %v336_v19 = vpack.c.bf16 %v335_v16, %v335_v16 }
  0x13   : > { %s308_s16 = scalar_lea.vmem %s704_s4, %s503_s13  ;;  %v318_v6 = vld [vmem:[%s299_s21] sm:$0xff]  ;;  %s505_s7 = sshll.u32 %s663_s9, 2 }
  0x14   : > { %v338_v3 = vld [vmem:[%s308_s16] sm:$0xff]  ;;  %s316_s11 = scalar_lea.vmem %s706_s6, %s505_s7 }
  0x15   : > { %v341_v4 = vpack.c.bf16 %v338_v3, %v338_v3 }
  0x17   : > { %343 = vrot.lane.b32.xlu1 %v341_v4, %s594_s17 }
  0x18   : > { %329 = vperm.xlu0 %552, %v326_v2  }
  0x82   : > { %v323_v5 = vpop.permute.xlu0 %322 }
  0x83   : > { %v325_v7 = vmul.f32 %v323_v5, %v318_v6 }
  0x89   : > { %v344_v11 = vpop.permute.xlu1 %343 }
  0x8a   : > { %v330_v8 = vpop.permute.xlu0 %329  ;;  %v351_v13 = vsel %vm349_vm0, %v344_v11, 0 }
  0x8b   : > { %v332_v10 = vadd.f32 %v330_v8, %v325_v7  ;;  %360 = vmatpush.bf16.msra.mxu0 %v351_v13 }
  0x8d   : > { %v333_v12 = vmax.f32 %v332_v10, 0.0 }
  0x8e   : > { %506 = vmatmul.msk.bf16.vlgmr.msra.gmra.mxu0 %vm345_vm1, %v340_v14 }
  0x8f   : > { %v334_v15 = vmin.f32 %v333_v12, 6.0 }
  0x91   : > { %v337_v17 = vpack.c.bf16 %v334_v15, %v334_v15 }
  0x93   : > { %v370_v18 = vsel %vm349_vm0, %v337_v17, 0 }
  0x94   : > { %379 = vmatpush.bf16.msra.mxu1 %v370_v18 }
  0x97   : > { %507 = vmatmul.msk.bf16.vlgmr.msra.gmra.mxu1 %vm345_vm1, %v336_v19 }
 0x10b   : > { %v362_v20 = vpop.f32.mrf.mxu0 }
 0x113   : > { %v364_v23 = vpop.f32.mrf.mxu0 }
 0x114   : > { %v381_v21 = vpop.f32.mrf.mxu1 }
 0x115   : > { %v382_v22 = vadd.f32 %v381_v21, %v362_v20 }
 0x117   : > { %386 = vst.msk [vmem:[%s316_s11] sm:$0xf] %vm385_vm2, %v382_v22 }
 0x11c   : > { %v383_v24 = vpop.f32.mrf.mxu1 }
 0x11d PF: > { %s16_s25 = sadd.s32 1, %s591_s25   ;;  %s707_s21 = smov %s583_s23 }
 0x11e   : > { %p13_p7 = scmp.ge.s32.totalorder %s16_s25, 18   ;;  %s708_s22 = smov %s587_s24 }
 0x11f   : > { %s709_s23 = smov %s712_s26  ;;  %s710_s24 = smov %s716_s27 }
 0x120   :  { %15 = sbr.rel (!%p13_p7) target bundleno = 3 (0x3), region = 77 }

</bundles_post_ra>
